<compile_context>
chip_gen: v5e
topology: v5e:2x2
jax: 0.10.0
libtpu: 0.0.40
codegen_flags: <defaults>
</compile_context>

<pallas_src>
import functools

import jax
import jax.numpy as jnp
from jax import lax
from jax.experimental import pallas as pl
from jax.experimental.pallas import tpu as pltpu


def _default_vmem_limit_bytes():
    """Generation-aware VMEM limit: ~3/4 of the core's VMEM, capped at 100 MiB."""
    try:
        cap = int(pltpu.get_tpu_info().vmem_capacity_bytes)
    except Exception:
        cap = 64 * 1024 * 1024  # conservative (v7x per-core VMEM)
    return int(min(0.75 * cap, 100 * 1024 * 1024))


def _attn_tile_vmem_bytes(tq, n_pad, c, cd_size, out_size):
    """Rough resident-VMEM estimate for a (TQ, Npad) attention tile."""
    x_block = 2 * c * n_pad * cd_size            # (1,C,Npad) input, double-buffered
    v_scratch = c * n_pad * cd_size              # persistent (C,Npad) value scratch
    out_block = 2 * c * tq * out_size            # (1,C,TQ) output, double-buffered
    attn = tq * n_pad * (3 * 4 + cd_size)        # energy/p f32 (+ headroom) + pc in cd
    small = 2 * (2 * c * c * cd_size + 2 * c * 4) + 2 * c * tq * 4
    return x_block + v_scratch + out_block + attn + small


def _choose_tq(n_pad, c, cd_size, out_size, budget_bytes):
    """Largest query tile (multiple of 128, dividing Npad) under the VMEM budget."""
    best = 128
    for cand in (128, 256, 512, 1024):
        if cand <= n_pad and n_pad % cand == 0 and \
                _attn_tile_vmem_bytes(cand, n_pad, c, cd_size, out_size) <= budget_bytes:
            best = cand
    return best


def _pam_kernel(x_ref, wqk_ref, ew_ref, wv_ref, bv_ref, o_ref, v_scr, *, n_valid):
    f32 = jnp.float32
    cd = v_scr.dtype
    c, n_pad = v_scr.shape
    tq = o_ref.shape[-1]

    # --- Per-batch value projection (gamma & bias already folded), computed once. ---
    @pl.when(pl.program_id(1) == 0)
    def _():
        v = jnp.dot(wv_ref[...], x_ref[0], preferred_element_type=f32) + bv_ref[...]
        v_scr[...] = v.astype(cd)

    # Query tile is a lane-aligned slice of the resident full (C, Npad) block.
    q0 = pl.multiple_of(pl.program_id(1) * tq, tq)
    xq = x_ref[0, :, pl.ds(q0, tq)]                        # (C, TQ), compute dtype

    # Folded QK^T with the key-side bias folded into the small matmul:
    #   energy[i, j] = (xq[:, i]^T (Wq^T Wk) + bq^T Wk) x[:, j]
    # (bk-dependent terms are constant along the softmax axis and cancel.)
    yq = lax.dot_general(xq, wqk_ref[...], (((0,), (0,)), ((), ())),
                         preferred_element_type=f32)       # (TQ, C), f32
    yq = yq + ew_ref[...]                                  # + (1, C) key-side bias
    energy = jnp.dot(yq.astype(cd), x_ref[0],
                     preferred_element_type=f32)           # (TQ, Npad), f32

    if n_pad != n_valid:
        # Mask padded key columns so they get zero softmax weight.
        col = lax.broadcasted_iota(jnp.int32, (1, n_pad), 1)
        energy = energy + jnp.where(col < n_valid,
                                    jnp.float32(0.0), jnp.float32(-1e30))

    # Numerically stable softmax over keys (lane axis); normalization deferred.
    m = jnp.max(energy, axis=-1, keepdims=True)            # (TQ, 1)
    p = jnp.exp(energy - m)                                # (TQ, Npad), f32
    pc = p.astype(cd)

    ones_row = jnp.ones((1, n_pad), dtype=cd)
    rowsum = lax.dot_general(ones_row, pc, (((1,), (1,)), ((), ())),
                             preferred_element_type=f32)   # (1, TQ)

    # out[c, i] = sum_j V[c, j] p[i, j]  (both operands contract on the lane axis).
    out = lax.dot_general(v_scr[...], pc, (((1,), (1,)), ((), ())),
                          preferred_element_type=f32)      # (C, TQ), f32

    recip = pl.reciprocal(rowsum, approx=False)            # exact; (1, TQ) is tiny
    o_ref[0] = (out * recip + xq.astype(f32)).astype(o_ref.dtype)


def pam_forward(x, wq, bq, wk, bk, wv, bv, gamma, *,
                compute_dtype=jnp.bfloat16, tq=None,
                vmem_budget_bytes=None, vmem_limit_bytes=None):
    """x: (B, C, H, W). wq/wk: (C//4, C, 1, 1), wv: (C, C, 1, 1), gamma: (1,)."""
    B, C, H, W = x.shape
    N = H * W
    C4 = wq.shape[0]
    cd = jnp.dtype(compute_dtype)
    f32 = jnp.float32
    out_dtype = jnp.dtype(x.dtype)

    # Lane-dense (B, C, N) layout; pad N up to a multiple of 128 so the tiled,
    # unmasked-store path is always used (padded keys are masked in-kernel).
    n_pad = -(-N // 128) * 128
    x_cn = x.reshape(B, C, N)
    if n_pad != N:
        x_cn = jnp.pad(x_cn, ((0, 0), (0, 0), (0, n_pad - N)))
    x_cn = x_cn.astype(cd)

    # Weight prep (all folding done once, in f32, then cast for the MXU).
    g = gamma.reshape(()).astype(f32)
    wq2 = wq.reshape(C4, C).astype(f32)
    wk2 = wk.reshape(C4, C).astype(f32)
    wqk = (wq2.T @ wk2).astype(cd)                          # (C, C) folded Wq^T Wk
    ew = (bq.astype(f32) @ wk2).reshape(1, C).astype(f32)   # (1, C) key-side bias
    wv2 = (g * wv.reshape(C, C).astype(f32)).astype(cd)     # gamma folded into Wv
    bv2 = (g * bv.astype(f32)).reshape(C, 1)                # gamma folded into bv

    if vmem_limit_bytes is None:
        vmem_limit_bytes = _default_vmem_limit_bytes()
    if vmem_budget_bytes is None:
        vmem_budget_bytes = int(0.7 * vmem_limit_bytes)
    if tq is None:
        tq = _choose_tq(n_pad, C, cd.itemsize, out_dtype.itemsize, vmem_budget_bytes)
    if n_pad % tq != 0 or tq % 128 != 0:
        raise ValueError(f"tq={tq} must divide padded N={n_pad} and be a multiple of 128")

    grid = (B, n_pad // tq)
    kernel = functools.partial(_pam_kernel, n_valid=N)

    out_cn = pl.pallas_call(
        kernel,
        out_shape=jax.ShapeDtypeStruct((B, C, n_pad), out_dtype),
        grid_spec=pltpu.PrefetchScalarGridSpec(
            num_scalar_prefetch=0,
            grid=grid,
            in_specs=[
                # Full (C, Npad) block per batch; constant across the query-tile
                # axis, so it is DMA'd once per batch element.
                pl.BlockSpec((1, C, n_pad), lambda b, q: (b, 0, 0)),
                pl.BlockSpec((C, C), lambda b, q: (0, 0)),   # Wq^T Wk  (compute dtype)
                pl.BlockSpec((1, C), lambda b, q: (0, 0)),   # bq^T Wk  (f32)
                pl.BlockSpec((C, C), lambda b, q: (0, 0)),   # gamma*Wv (compute dtype)
                pl.BlockSpec((C, 1), lambda b, q: (0, 0)),   # gamma*bv (f32)
            ],
            out_specs=pl.BlockSpec((1, C, tq), lambda b, q: (b, 0, q)),
            scratch_shapes=[pltpu.VMEM((C, n_pad), cd)],     # per-batch value scratch
        ),
        compiler_params=pltpu.CompilerParams(
            # q axis must be "arbitrary" so the per-batch value scratch written at
            # q == 0 is always visible to later query tiles (megacore-safe).
            dimension_semantics=("parallel", "arbitrary"),
            vmem_limit_bytes=int(vmem_limit_bytes),
        ),
    )(x_cn, wqk, ew, wv2, bv2)

    if n_pad != N:
        out_cn = out_cn[:, :, :N]
    return out_cn.reshape(B, C, H, W)


def pam_reference(x, wq, bq, wk, bk, wv, bv, gamma):
    """Pure-JAX reference mirroring the PyTorch forward exactly."""
    B, C, H, W = x.shape
    N = H * W

    def conv1x1(xx, w, b):
        w2 = w.reshape(w.shape[0], C)
        return jnp.einsum('oc,bchw->bohw', w2, xx) + b[None, :, None, None]

    proj_query = conv1x1(x, wq, bq).reshape(B, -1, N).transpose(0, 2, 1)   # (B, N, C4)
    proj_key = conv1x1(x, wk, bk).reshape(B, -1, N)                        # (B, C4, N)
    energy = jnp.einsum('bnc,bcm->bnm', proj_query, proj_key)              # (B, N, N)
    attention = jax.nn.softmax(energy, axis=-1)
    proj_value = conv1x1(x, wv, bv).reshape(B, C, N)                       # (B, C, N)
    out = jnp.einsum('bcj,bij->bci', proj_value, attention)                # (B, C, N)
    out = out.reshape(B, C, H, W)
    return gamma.reshape(()) * out + x


if __name__ == "__main__":
    B, C, H, W = 2, 8, 16, 16
    C4 = C // 4

    key = jax.random.PRNGKey(0)
    kx, kq, kk, kv, kbq, kbk, kbv, kx2 = jax.random.split(key, 8)

    x = jax.random.normal(kx, (B, C, H, W), dtype=jnp.float32)
    wq = jax.random.normal(kq, (C4, C, 1, 1), dtype=jnp.float32) * 0.2
    wk = jax.random.normal(kk, (C4, C, 1, 1), dtype=jnp.float32) * 0.2
    wv = jax.random.normal(kv, (C, C, 1, 1), dtype=jnp.float32) * 0.2
    bq = jax.random.normal(kbq, (C4,), dtype=jnp.float32) * 0.1
    bk = jax.random.normal(kbk, (C4,), dtype=jnp.float32) * 0.1
    bv = jax.random.normal(kbv, (C,), dtype=jnp.float32) * 0.1
    # PyTorch inits gamma to 0 (output == x); use a nonzero value so the attention
    # path is actually exercised/verified.
    gamma = jnp.array([0.5], dtype=jnp.float32)

    ref = pam_reference(x, wq, bq, wk, bk, wv, bv, gamma)

    # Default bf16 MXU-operand path, auto tile size.
    out_bf16 = pam_forward(x, wq, bq, wk, bk, wv, bv, gamma)
    jax.block_until_ready(out_bf16)
    assert out_bf16.shape == (B, C, H, W)
    err16 = jnp.max(jnp.abs(out_bf16 - ref))
    assert jnp.allclose(out_bf16, ref, atol=4e-2, rtol=4e-2), f"bf16 max abs err = {err16}"

    # f32 path, TQ forced to 128 so the query-tiling loop (grid=(B, 2)) and the
    # persistent per-batch value scratch are exercised.
    out_f32 = pam_forward(x, wq, bq, wk, bk, wv, bv, gamma,
                          compute_dtype=jnp.float32, tq=128)
    jax.block_until_ready(out_f32)
    err32 = jnp.max(jnp.abs(out_f32 - ref))
    assert jnp.allclose(out_f32, ref, atol=5e-3, rtol=5e-3), f"f32 max abs err = {err32}"

    # Spatial size whose N is not a multiple of 128 (N = 60 -> padded to 128),
    # exercising the key-padding / masking path.
    H2, W2 = 6, 10
    x2 = jax.random.normal(kx2, (B, C, H2, W2), dtype=jnp.float32)
    ref2 = pam_reference(x2, wq, bq, wk, bk, wv, bv, gamma)
    out2 = pam_forward(x2, wq, bq, wk, bk, wv, bv, gamma, compute_dtype=jnp.float32)
    jax.block_until_ready(out2)
    err2 = jnp.max(jnp.abs(out2 - ref2))
    assert jnp.allclose(out2, ref2, atol=5e-3, rtol=5e-3), f"padded-N max abs err = {err2}"

    print("KERNEL_OK")
</pallas_src>

<mosaic_0001>
module attributes {stable_mosaic.version = 11 : i64} {
  func.func @_pam_kernel(%arg0: i32, %arg1: i32, %arg2: memref<1x8x256xbf16, #tpu.memory_space<vmem>>, %arg3: memref<8x8xbf16, #tpu.memory_space<vmem>>, %arg4: memref<1x8xf32, #tpu.memory_space<vmem>>, %arg5: memref<8x8xbf16, #tpu.memory_space<vmem>>, %arg6: memref<8x1xf32, #tpu.memory_space<vmem>>, %arg7: memref<1x8x256xf32, #tpu.memory_space<vmem>>, %arg8: memref<8x256xbf16, #tpu.memory_space<vmem>>) attributes {dimension_semantics = [#tpu.dimension_semantics<parallel>, #tpu.dimension_semantics<arbitrary>], iteration_bounds = array<i64: 2, 1>, scalar_prefetch = 0 : i64, scratch_operands = 1 : i64, tpu.core_type = #tpu.core_type<tc>, window_params = [{transform_indices = @transform_0, window_bounds = array<i64: 1, 8, 256>}, {pipeline_mode = #tpu.pipeline_mode<synchronous>, transform_indices = @transform_1, window_bounds = array<i64: 8, 8>}, {pipeline_mode = #tpu.pipeline_mode<synchronous>, transform_indices = @transform_2, window_bounds = array<i64: 1, 8>}, {pipeline_mode = #tpu.pipeline_mode<synchronous>, transform_indices = @transform_3, window_bounds = array<i64: 8, 8>}, {pipeline_mode = #tpu.pipeline_mode<synchronous>, transform_indices = @transform_4, window_bounds = array<i64: 8, 1>}, {transform_indices = @transform_5, window_bounds = array<i64: 1, 8, 256>}]} {
    %c0_i32 = arith.constant 0 : i32
    %0 = arith.cmpi eq, %arg1, %c0_i32 : i32
    %1 = arith.extui %0 : i1 to i32
    %c0_i32_0 = arith.constant 0 : i32
    %2 = arith.cmpi ne, %1, %c0_i32_0 : i32
    scf.if %2 {
      %c0_19 = arith.constant 0 : index
      %c0_20 = arith.constant 0 : index
      %35 = vector.load %arg5[%c0_19, %c0_20] : memref<8x8xbf16, #tpu.memory_space<vmem>>, vector<8x8xbf16>
      %c0_21 = arith.constant 0 : index
      %c0_22 = arith.constant 0 : index
      %c0_23 = arith.constant 0 : index
      %36 = vector.load %arg2[%c0_21, %c0_22, %c0_23] : memref<1x8x256xbf16, #tpu.memory_space<vmem>>, vector<1x8x256xbf16>
      %37 = vector.shape_cast %36 : vector<1x8x256xbf16> to vector<8x256xbf16>
      %cst_24 = arith.constant dense<0.000000e+00> : vector<8x256xf32>
      %38 = tpu.matmul %35, %37, %cst_24 {dimension_numbers = #tpu.dot_dimension_numbers<[1], [0], [0], [1], [0, 0, 1, 1], [], []>} : vector<8x8xbf16>, vector<8x256xbf16>, vector<8x256xf32> -> vector<8x256xf32>
      %c0_25 = arith.constant 0 : index
      %c0_26 = arith.constant 0 : index
      %39 = vector.load %arg6[%c0_25, %c0_26] : memref<8x1xf32, #tpu.memory_space<vmem>>, vector<8x1xf32>
      %40 = vector.broadcast %39 : vector<8x1xf32> to vector<8x256xf32>
      %41 = arith.addf %38, %40 : vector<8x256xf32>
      %42 = arith.truncf %41 : vector<8x256xf32> to vector<8x256xbf16>
      %c0_27 = arith.constant 0 : index
      %c0_28 = arith.constant 0 : index
      %43 = vector.load %arg8[%c0_27, %c0_28] : memref<8x256xbf16, #tpu.memory_space<vmem>>, vector<8x256xbf16>
      tpu.vector_store %arg8[%c0_27, %c0_28], %42 {strides = array<i32>} : memref<8x256xbf16, #tpu.memory_space<vmem>>, vector<8x256xbf16>,
    } else {
    }
    %c256_i32 = arith.constant 256 : i32
    %3 = arith.muli %arg1, %c256_i32 : i32
    %4 = tpu.assume_multiple %3, 256 : i32
    %c0 = arith.constant 0 : index
    %c0_1 = arith.constant 0 : index
    %5 = arith.index_cast %4 : i32 to index
    %6 = vector.load %arg2[%c0, %c0_1, %5] : memref<1x8x256xbf16, #tpu.memory_space<vmem>>, vector<1x8x256xbf16>
    %7 = vector.shape_cast %6 : vector<1x8x256xbf16> to vector<8x256xbf16>
    %c0_2 = arith.constant 0 : index
    %c0_3 = arith.constant 0 : index
    %8 = vector.load %arg3[%c0_2, %c0_3] : memref<8x8xbf16, #tpu.memory_space<vmem>>, vector<8x8xbf16>
    %cst = arith.constant dense<0.000000e+00> : vector<256x8xf32>
    %9 = tpu.matmul %7, %8, %cst {dimension_numbers = #tpu.dot_dimension_numbers<[0], [0], [1], [1], [0, 1, 1, 1], [], []>} : vector<8x256xbf16>, vector<8x8xbf16>, vector<256x8xf32> -> vector<256x8xf32>
    %c0_4 = arith.constant 0 : index
    %c0_5 = arith.constant 0 : index
    %10 = vector.load %arg4[%c0_4, %c0_5] : memref<1x8xf32, #tpu.memory_space<vmem>>, vector<1x8xf32>
    %11 = vector.broadcast %10 : vector<1x8xf32> to vector<256x8xf32>
    %12 = arith.addf %9, %11 : vector<256x8xf32>
    %13 = arith.truncf %12 : vector<256x8xf32> to vector<256x8xbf16>
    %c0_6 = arith.constant 0 : index
    %c0_7 = arith.constant 0 : index
    %c0_8 = arith.constant 0 : index
    %14 = vector.load %arg2[%c0_6, %c0_7, %c0_8] : memref<1x8x256xbf16, #tpu.memory_space<vmem>>, vector<1x8x256xbf16>
    %15 = vector.shape_cast %14 : vector<1x8x256xbf16> to vector<8x256xbf16>
    %cst_9 = arith.constant dense<0.000000e+00> : vector<256x256xf32>
    %16 = tpu.matmul %13, %15, %cst_9 {dimension_numbers = #tpu.dot_dimension_numbers<[1], [0], [0], [1], [0, 0, 1, 1], [], []>} : vector<256x8xbf16>, vector<8x256xbf16>, vector<256x256xf32> -> vector<256x256xf32>
    %cst_10 = arith.constant dense<0xFF800000> : vector<256xf32>
    %17 = vector.multi_reduction <maximumf>, %16, %cst_10 [1] : vector<256x256xf32> to vector<256xf32>
    %18 = vector.shape_cast %17 : vector<256xf32> to vector<256x1xf32>
    %19 = vector.broadcast %18 : vector<256x1xf32> to vector<256x256xf32>
    %20 = arith.subf %16, %19 : vector<256x256xf32>
    %21 = math.exp %20 : vector<256x256xf32>
    %22 = arith.truncf %21 : vector<256x256xf32> to vector<256x256xbf16>
    %cst_11 = arith.constant 1.000000e+00 : bf16
    %23 = vector.broadcast %cst_11 : bf16 to vector<1x256xbf16>
    %cst_12 = arith.constant dense<0.000000e+00> : vector<1x256xf32>
    %24 = tpu.matmul %23, %22, %cst_12 {dimension_numbers = #tpu.dot_dimension_numbers<[1], [1], [0], [0], [0, 0, 1, 0], [], []>} : vector<1x256xbf16>, vector<256x256xbf16>, vector<1x256xf32> -> vector<1x256xf32>
    %c0_13 = arith.constant 0 : index
    %c0_14 = arith.constant 0 : index
    %25 = vector.load %arg8[%c0_13, %c0_14] : memref<8x256xbf16, #tpu.memory_space<vmem>>, vector<8x256xbf16>
    %cst_15 = arith.constant dense<0.000000e+00> : vector<8x256xf32>
    %26 = tpu.matmul %25, %22, %cst_15 {dimension_numbers = #tpu.dot_dimension_numbers<[1], [1], [0], [0], [0, 0, 1, 0], [], []>} : vector<8x256xbf16>, vector<256x256xbf16>, vector<8x256xf32> -> vector<8x256xf32>
    %27 = tpu.reciprocal %24 : vector<1x256xf32> -> vector<1x256xf32>
    %28 = vector.broadcast %27 : vector<1x256xf32> to vector<8x256xf32>
    %29 = arith.mulf %26, %28 : vector<8x256xf32>
    %30 = arith.extf %7 : vector<8x256xbf16> to vector<8x256xf32>
    %31 = arith.addf %29, %30 : vector<8x256xf32>
    %c0_16 = arith.constant 0 : index
    %c0_17 = arith.constant 0 : index
    %c0_18 = arith.constant 0 : index
    %32 = vector.load %arg7[%c0_16, %c0_17, %c0_18] : memref<1x8x256xf32, #tpu.memory_space<vmem>>, vector<1x8x256xf32>
    %33 = vector.shape_cast %32 : vector<1x8x256xf32> to vector<8x256xf32>
    %34 = vector.shape_cast %31 : vector<8x256xf32> to vector<1x8x256xf32>
    tpu.vector_store %arg7[%c0_16, %c0_17, %c0_18], %34 {strides = array<i32>} : memref<1x8x256xf32, #tpu.memory_space<vmem>>, vector<1x8x256xf32>,
    return
  }
  func.func @transform_0(%arg0: i32, %arg1: i32) -> (i32, i32, i32) {
    %c0_i32 = arith.constant 0 : i32
    %c0_i32_0 = arith.constant 0 : i32
    %c0_i32_1 = arith.constant 0 : i32
    return %arg0, %c0_i32, %c0_i32_0 : i32, i32, i32
  }
  func.func @transform_1(%arg0: i32, %arg1: i32) -> (i32, i32) {
    %c0_i32 = arith.constant 0 : i32
    %c0_i32_0 = arith.constant 0 : i32
    %c0_i32_1 = arith.constant 0 : i32
    return %c0_i32, %c0_i32_0 : i32, i32
  }
  func.func @transform_2(%arg0: i32, %arg1: i32) -> (i32, i32) {
    %c0_i32 = arith.constant 0 : i32
    %c0_i32_0 = arith.constant 0 : i32
    %c0_i32_1 = arith.constant 0 : i32
    return %c0_i32, %c0_i32_0 : i32, i32
  }
  func.func @transform_3(%arg0: i32, %arg1: i32) -> (i32, i32) {
    %c0_i32 = arith.constant 0 : i32
    %c0_i32_0 = arith.constant 0 : i32
    %c0_i32_1 = arith.constant 0 : i32
    return %c0_i32, %c0_i32_0 : i32, i32
  }
  func.func @transform_4(%arg0: i32, %arg1: i32) -> (i32, i32) {
    %c0_i32 = arith.constant 0 : i32
    %c0_i32_0 = arith.constant 0 : i32
    %c0_i32_1 = arith.constant 0 : i32
    return %c0_i32, %c0_i32_0 : i32, i32
  }
  func.func @transform_5(%arg0: i32, %arg1: i32) -> (i32, i32, i32) {
    %c0_i32 = arith.constant 0 : i32
    %c0_i32_0 = arith.constant 0 : i32
    return %arg0, %c0_i32, %arg1 : i32, i32, i32
  }
}

</mosaic_0001>

<bundles_post_ra>
// kernel: tpu_custom_call.1
= control target key start
LH: loop header
LB: loop body
LE: loop exit
PB: predicated region body
PF: predicated region fallthrough
CT: control target
= control target key end

     0   :  { %10 = vsyncpa [#allocation4], 0  ;;  %s2326_s0 = inlined_call_operand.hbm [shape: bf16[2,8,256], index: 0, kind: input, shape index: {}]   ;;  %s2327_s1 = inlined_call_operand.vmem [shape: bf16[8,8], index: 1, kind: input, shape index: {}]   ;;  %s2328_s2 = inlined_call_operand.vmem [shape: f32[1,8], index: 2, kind: input, shape index: {}]   ;;  %s2329_s3 = inlined_call_operand.vmem [shape: bf16[8,8], index: 3, kind: input, shape index: {}]   ;;  %s2330_s4 = inlined_call_operand.vmem [shape: f32[8,1], index: 4, kind: input, shape index: {}]   ;;  %s2331_s5 = inlined_call_operand.hbm [shape: f32[2,8,256], index: 5, kind: output, shape index: {}]  }
   0x1   :  { %12 = vsyncpa [#allocation4 + $0x1], 0 }
   0x2   :  { %13 = vsyncpa [#allocation5], 0 }
   0x3   :  { %15 = vsyncpa [#allocation5 + $0x1], 0  ;;  %s1739_s18 = smov 0   ;;  %s1741_s19 = smov 0  }
   0x4   :  { %s1743_s20 = smov 0   ;;  %s1745_s21 = smov 0  }
   0x5   :  { %s1747_s22 = smov 0   ;;  %s1749_s23 = smov 0  }
   0x6 LB: > { %s1326_s24 = sadd.s32 4294967295, %s1705_s23   ;;  %s1327_s25 = sadd.s32 4294967294, %s1705_s23   ;;  %s1705_s23 = sphi %s1749_s23, %s21_s23   ;;  %s1701_s22 = sphi %s1747_s22, %s2377_s22   ;;  %s1697_s21 = sphi %s1745_s21, %s2376_s21   ;;  %s1693_s20 = sphi %s1743_s20, %s2375_s20   ;;  %s1689_s19 = sphi %s1741_s19, %s2374_s19   ;;  %s1685_s18 = sphi %s1739_s18, %s2373_s18  }
   0x7   : > { %s33_s26 = sadd.s32 1, %s1701_s22  ;;  %s40_s27 = sadd.s32 1, %s1693_s20 }
   0x8   : > { %p35_p0 = scmp.ge.s32.totalorder %s33_s26, 2  ;;  %p47_p1 = scmp.ne.s32.totalorder %s1693_s20, %s1689_s19 }
   0x9   : > { %p48_p2 = scmp.eq.s32.totalorder %s1705_s23, 0  ;;  %p53_p3 = scmp.ne.s32.totalorder %s1689_s19, %s1685_s18 }
   0xa   : > { %s2379_s26 = smov (%p35_p0, %s33_s26), 0  ;;  %p54_p5 = scmp.eq.s32.totalorder %s1326_s24, 0 }
   0xb   : > { %p1780_p4 = por %p48_p2, %p47_p1  ;;  %s37_s29 = ssub.s32 %s1701_s22, %s2379_s26 }
   0xc   : > { %p163_p6 = scmp.eq.s32.totalorder %s1326_s24, 1  ;;  %p38_p7 = scmp.eq.s32.totalorder %s37_s29, 0 }
   0xd   : > { %p1786_p8 = por %p54_p5, %p53_p3  ;;  %p169_p10 = scmp.eq.s32.totalorder %s1327_s25, 1 }
   0xe   : > { %p1790_p9 = por %p163_p6, %p47_p1  ;;  %p1329_p12 = scmp.ge.s32.totalorder %s1705_s23, 2 }
   0xf   : > { %s1795_s7 = scalar_select %p38_p7, %s1693_s20, %s40_s27  }
  0x10   : > { %p1797_p11 = por %p169_p10, %p53_p3  ;;  %p1405_p13 = scmp.lt.s32.totalorder %s1705_s23, 2 }
  0x11   : > { %s201_s9 = sand.u32 1, %s1693_s20   ;;  %s1391_s11 = sshll.u32 %s1701_s22, 3 }
  0x12   : > { %s1330_s10 = sshll.u32 %s201_s9, 3  ;;  %s210_s14 = scalar_lea.hbm %s2326_s0, %s1391_s11 }
  0x13   : > { %s205_s15 = scalar_lea.vmem [#allocation3], %s1330_s10  ;;  %s212_s17 = sshll.u32 %s210_s14, 4  ;;  %s213_s17 = int_to_ptr.hbm [resolvable:$true] %s212_s17 }
  0x14   : > { %s214_s16 = sshll.u32 %s205_s15, 4  ;;  %p1398_p0 = pnand %p1405_p13, %p1780_p4  ;;  %s215_s16 = int_to_ptr.vmem [resolvable:$true] %s214_s16 }
  0x15   : > { %p1333_p1 = scmp.ge.s32.totalorder %s1705_s23, 1  ;;  %p219_p2 = scmp.lt.s32.totalorder %s1705_s23, 3 }
  0x16   : > { %s202_s24 = scalar_lea.sflag [#allocation4], %s201_s9 }
  0x17   : > { %1400 = dma.hbm_to_vmem [thread:$0]  (!%p1398_p0), %s213_s17, 128, %s215_s16, %s202_s24  }
  0x18   : > { %p220_p3 = pnand %p1333_p1, %p219_p2 }
  0x1a   : > { %223 = sbr.rel (%p220_p3) target bundleno = 1195 (0x4ab), region = 40 }
  0x1f   : > { %s1813_s25 = sand.u32 1, %s1689_s19  }
  0x20   : > { %s1334_s27 = sshll.u32 %s1813_s25, 3  ;;  %s226_s29 = scalar_lea.sflag [#allocation4], %s1813_s25 }
  0x21   : > { %s1817_s10 = scalar_lea.vmem [#allocation3], %s1334_s27 }
  0x22   : > { %1676 = dma.done.wait (%p1786_p8), %s226_s29, 128  }
  0x23   : > { %1678 = vsyncadd (%p1786_p8), %s226_s29, 4294967168  ;;  %v321_v0 = vld [vmem:[%s1817_s10] sm:$0xff]  ;;  %vm281_vm0 = vcmask 1043456   ;;  %vm277_vm1 = vcmask 64512   ;;  %s1335_s16 = sshll.u32 %s1813_s25, 4  ;;  %s1392_s24 = sshll.u32 %s1697_s21, 4 }
  0x24   : > { %v328_v1 = vunpack.c.l.b16 %v321_v0  ;;  %v329_v2 = vunpack.c.h.b16 %v321_v0  ;;  %v322_v3 = vld [vmem:[%s2327_s1] sm:$0xf]  ;;  %s2283_s17 = scalar_lea.vmem [#allocation6], %s1335_s16  ;;  %s1225_s21 = scalar_lea.sflag [#allocation5], %s1813_s25 }
  0x25   : > { %v409_v6 = vsel %vm281_vm0, %v322_v3, 0  ;;  %v264_v8 = vld [vmem:[%s2329_s3] sm:$0xf]  ;;  %s1240_s28 = sshll.u32 %s2283_s17, 4  ;;  %s1643_s14 = scalar_lea.hbm %s2331_s5, 32  ;;  %s1241_s28 = int_to_ptr.vmem [resolvable:$true] %s1240_s28 }
  0x26   : > { %v330_v4 = vpack.c.b16 %v328_v1, %v328_v1  ;;  %v331_v5 = vpack.c.b16 %v329_v2, %v329_v2  ;;  %v1849_v28 = vld [vmem:[%s2328_s2] ss:$0 sm:$0xff] }
  0x28   : > { %334 = vxpose.binary.xlu0.c.b16.start.end [1/2] (short) %v331_v5, %v330_v4, 128  ;;  %v286_v7 = vsel %vm281_vm0, %v331_v5, 0  ;;  %v283_v22 = vsel %vm281_vm0, %v330_v4, 0 }
  0x29   : > { %308 = vmatpush.bf16.msra.mxu2 %v286_v7  ;;  %295 = vmatpush.bf16.msra.mxu0 %v283_v22 }
  0x2a   : > { %583 = vmatpush.bf16.msra.mxu3 %v283_v22 }
  0x2c   : > { %1337 = vmatmul.msk.bf16.vlgmr.msra.gmra.mxu2 %vm277_vm1, %v264_v8  ;;  %1336 = vmatmul.msk.bf16.vlgmr.msra.gmra.mxu0 %vm277_vm1, %v264_v8 }
  0x2d   : > { %418 = vmatpush.bf16.msrb.mxu2 %v409_v6  ;;  %672 = vmatpush.bf16.msrb.mxu0 %v286_v7 }
  0xa9   : > { %v1876_v54 = vpop.f32.mrf.mxu0 }
  0xaa   : > { %2348 = vst [vmem:[#allocation10_spill] sm:$0xff] %v1876_v54 }
  0xaf   : > { %v1838_v19 = vpop.f32.mrf.mxu2 }
  0xb0   : > { %2347 = vst [vmem:[#allocation9_spill] sm:$0xff] %v1838_v19 }
  0xb1   : > { %v299_v58 = vpop.f32.mrf.mxu0 }
  0xb7   : > { %v312_v21 = vpop.f32.mrf.mxu2 }
  0xd4   : > { %v342_v9 = vpop.trf.xlu0 }
  0xd5   : > { %1338 = vmatmul.msk.bf16.vlgmr.msrb.gmra.mxu2 %vm277_vm1, %v342_v9 }
  0xdc   : > { %v343_v10 = vpop.trf.xlu0 }
  0xe4   : > { %v344_v11 = vpop.trf.xlu0 }
  0xe5   : > { %1339 = vmatmul.msk.bf16.gmra.mxu2 %vm277_vm1, %v344_v11 }
  0xec   : > { %v345_v12 = vpop.trf.xlu0 }
  0xf4   : > { %v346_v13 = vpop.trf.xlu0 }
  0xf5   : > { %1340 = vmatmul.msk.bf16.gmra.mxu2 %vm277_vm1, %v346_v13 }
  0xfc   : > { %v347_v14 = vpop.trf.xlu0 }
 0x104   : > { %v348_v15 = vpop.trf.xlu0 }
 0x105   : > { %1341 = vmatmul.msk.bf16.gmra.mxu2 %vm277_vm1, %v348_v15 }
 0x10c   : > { %v349_v16 = vpop.trf.xlu0 }
 0x114   : > { %v350_v17 = vpop.trf.xlu0 }
 0x115   : > { %1342 = vmatmul.msk.bf16.gmra.mxu2 %vm277_vm1, %v350_v17 }
 0x11c   : > { %v351_v18 = vpop.trf.xlu0 }
 0x124   : > { %v352_v20 = vpop.trf.xlu0 }
 0x125   : > { %1343 = vmatmul.msk.bf16.gmra.mxu2 %vm277_vm1, %v352_v20 }
 0x12c   : > { %v353_v23 = vpop.trf.xlu0 }
 0x134   : > { %v354_v24 = vpop.trf.xlu0 }
 0x135   : > { %1344 = vmatmul.msk.bf16.gmra.mxu2 %vm277_vm1, %v354_v24 }
 0x13c   : > { %v355_v25 = vpop.trf.xlu0 }
 0x144   : > { %v356_v26 = vpop.trf.xlu0 }
 0x145   : > { %1345 = vmatmul.msk.bf16.gmra.mxu2 %vm277_vm1, %v356_v26 }
 0x14c   : > { %v357_v0 = vpop.trf.xlu0 }
 0x155   : > { %1346 = vmatmul.msk.bf16.gmra.mxu2 %vm277_vm1, %v343_v10 }
 0x158   : > { %v420_v27 = vpop.f32.mrf.mxu2 }
 0x159   : > { %v421_v30 = vadd.f32 %v1849_v28, %v420_v27 }
 0x160   : > { %v422_v29 = vpop.f32.mrf.mxu2 }
 0x161   : > { %v423_v31 = vadd.f32 %v1849_v28, %v422_v29 }
 0x163   : > { %v500_v32 = vpack.c.bf16 %v423_v31, %v421_v30 }
 0x165   : > { %1347 = vmatmul.msk.bf16.gmra.mxu2 %vm277_vm1, %v345_v12  ;;  %1354 = vmatmul.msk.bf16.vlgmr.msra.gmra.mxu3 %vm277_vm1, %v500_v32 }
 0x166   : > { %1370 = vmatmul.msk.bf16.vlgmr.msrb.gmra.mxu0 %vm277_vm1, %v500_v32 }
 0x168   : > { %v425_v33 = vpop.f32.mrf.mxu2 }
 0x169   : > { %v426_v35 = vadd.f32 %v1849_v28, %v425_v33 }
 0x170   : > { %v427_v34 = vpop.f32.mrf.mxu2 }
 0x171   : > { %v428_v36 = vadd.f32 %v1849_v28, %v427_v34 }
 0x173   : > { %v501_v37 = vpack.c.bf16 %v428_v36, %v426_v35 }
 0x175   : > { %1348 = vmatmul.msk.bf16.gmra.mxu2 %vm277_vm1, %v347_v14  ;;  %1355 = vmatmul.msk.bf16.gmra.mxu3 %vm277_vm1, %v501_v37 }
 0x176   : > { %1371 = vmatmul.msk.bf16.gmra.mxu0 %vm277_vm1, %v501_v37 }
 0x178   : > { %v430_v38 = vpop.f32.mrf.mxu2 }
 0x179   : > { %v431_v40 = vadd.f32 %v1849_v28, %v430_v38 }
 0x180   : > { %v432_v39 = vpop.f32.mrf.mxu2 }
 0x181   : > { %v433_v41 = vadd.f32 %v1849_v28, %v432_v39 }
 0x183   : > { %v502_v42 = vpack.c.bf16 %v433_v41, %v431_v40 }
 0x185   : > { %1349 = vmatmul.msk.bf16.gmra.mxu2 %vm277_vm1, %v349_v16  ;;  %1356 = vmatmul.msk.bf16.gmra.mxu3 %vm277_vm1, %v502_v42 }
 0x186   : > { %1372 = vmatmul.msk.bf16.gmra.mxu0 %vm277_vm1, %v502_v42 }
 0x188   : > { %v435_v43 = vpop.f32.mrf.mxu2 }
 0x189   : > { %v436_v45 = vadd.f32 %v1849_v28, %v435_v43 }
 0x190   : > { %v437_v44 = vpop.f32.mrf.mxu2 }
 0x191   : > { %v438_v46 = vadd.f32 %v1849_v28, %v437_v44 }
 0x193   : > { %v503_v47 = vpack.c.bf16 %v438_v46, %v436_v45 }
 0x195   : > { %1350 = vmatmul.msk.bf16.gmra.mxu2 %vm277_vm1, %v351_v18  ;;  %1357 = vmatmul.msk.bf16.gmra.mxu3 %vm277_vm1, %v503_v47 }
 0x196   : > { %1373 = vmatmul.msk.bf16.gmra.mxu0 %vm277_vm1, %v503_v47 }
 0x198   : > { %v440_v48 = vpop.f32.mrf.mxu2 }
 0x199   : > { %v441_v50 = vadd.f32 %v1849_v28, %v440_v48 }
 0x1a0   : > { %v442_v49 = vpop.f32.mrf.mxu2 }
 0x1a1   : > { %v443_v51 = vadd.f32 %v1849_v28, %v442_v49 }
 0x1a3   : > { %v504_v52 = vpack.c.bf16 %v443_v51, %v441_v50 }
 0x1a5   : > { %1351 = vmatmul.msk.bf16.gmra.mxu2 %vm277_vm1, %v353_v23  ;;  %1358 = vmatmul.msk.bf16.gmra.mxu3 %vm277_vm1, %v504_v52 }
 0x1a6   : > { %1374 = vmatmul.msk.bf16.gmra.mxu0 %vm277_vm1, %v504_v52 }
 0x1a8   : > { %v445_v53 = vpop.f32.mrf.mxu2 }
 0x1a9   : > { %v446_v56 = vadd.f32 %v1849_v28, %v445_v53 }
 0x1b0   : > { %v447_v55 = vpop.f32.mrf.mxu2 }
 0x1b1   : > { %v448_v57 = vadd.f32 %v1849_v28, %v447_v55 }
 0x1b3   : > { %v505_v59 = vpack.c.bf16 %v448_v57, %v446_v56 }
 0x1b5   : > { %1352 = vmatmul.msk.bf16.gmra.mxu2 %vm277_vm1, %v355_v25  ;;  %1359 = vmatmul.msk.bf16.gmra.mxu3 %vm277_vm1, %v505_v59 }
 0x1b6   : > { %1375 = vmatmul.msk.bf16.gmra.mxu0 %vm277_vm1, %v505_v59 }
 0x1b8   : > { %v450_v60 = vpop.f32.mrf.mxu2 }
 0x1b9   : > { %v451_v62 = vadd.f32 %v1849_v28, %v450_v60 }
 0x1c0   : > { %v452_v61 = vpop.f32.mrf.mxu2 }
 0x1c1   : > { %v453_v63 = vadd.f32 %v1849_v28, %v452_v61 }
 0x1c3   : > { %v506_v1 = vpack.c.bf16 %v453_v63, %v451_v62 }
 0x1c5   : > { %1353 = vmatmul.msk.bf16.gmra.mxu2 %vm277_vm1, %v357_v0  ;;  %1360 = vmatmul.msk.bf16.gmra.mxu3 %vm277_vm1, %v506_v1 }
 0x1c6   : > { %1376 = vmatmul.msk.bf16.gmra.mxu0 %vm277_vm1, %v506_v1 }
 0x1c8   : > { %v455_v2 = vpop.f32.mrf.mxu2 }
 0x1c9   : > { %v456_v4 = vadd.f32 %v1849_v28, %v455_v2 }
 0x1d0   : > { %v457_v3 = vpop.f32.mrf.mxu2 }
 0x1d1   : > { %v458_v5 = vadd.f32 %v1849_v28, %v457_v3 }
 0x1d3   : > { %v507_v6 = vpack.c.bf16 %v458_v5, %v456_v4 }
 0x1d5   : > { %1361 = vmatmul.msk.bf16.gmra.mxu3 %vm277_vm1, %v507_v6 }
 0x1d6   : > { %1377 = vmatmul.msk.bf16.gmra.mxu0 %vm277_vm1, %v507_v6 }
 0x1d8   : > { %v460_v7 = vpop.f32.mrf.mxu2 }
 0x1d9   : > { %v461_v9 = vadd.f32 %v1849_v28, %v460_v7 }
 0x1e0   : > { %v462_v8 = vpop.f32.mrf.mxu2 }
 0x1e1   : > { %v463_v10 = vadd.f32 %v1849_v28, %v462_v8 }
 0x1e3   : > { %v508_v11 = vpack.c.bf16 %v463_v10, %v461_v9  ;;  %v1894_v12 = vpop.f32.mrf.mxu0 }
 0x1e4   : > { %2349 = vst [vmem:[#allocation11_spill] sm:$0xff] %v1894_v12 }
 0x1e5   : > { %1362 = vmatmul.msk.bf16.gmra.mxu3 %vm277_vm1, %v508_v11 }
 0x1e6   : > { %1378 = vmatmul.msk.bf16.gmra.mxu0 %vm277_vm1, %v508_v11 }
 0x1e8   : > { %v465_v13 = vpop.f32.mrf.mxu2  ;;  %v1898_v14 = vpop.f32.mrf.mxu3 }
 0x1e9   : > { %2350 = vst [vmem:[#allocation12_spill] sm:$0xff] %v1898_v14  ;;  %v466_v18 = vadd.f32 %v1849_v28, %v465_v13 }
 0x1eb   : > { %v1900_v15 = vpop.f32.mrf.mxu0 }
 0x1ec   : > { %2351 = vst [vmem:[#allocation13_spill] sm:$0xff] %v1900_v15 }
 0x1f0   : > { %v467_v16 = vpop.f32.mrf.mxu2  ;;  %v1902_v17 = vpop.f32.mrf.mxu3 }
 0x1f1   : > { %2352 = vst [vmem:[#allocation14_spill] sm:$0xff] %v1902_v17  ;;  %v468_v20 = vadd.f32 %v1849_v28, %v467_v16 }
 0x1f3   : > { %v509_v21 = vpack.c.bf16 %v468_v20, %v466_v18  ;;  %v1906_v22 = vpop.f32.mrf.mxu0 }
 0x1f5   : > { %1363 = vmatmul.msk.bf16.gmra.mxu3 %vm277_vm1, %v509_v21 }
 0x1f6   : > { %1379 = vmatmul.msk.bf16.gmra.mxu0 %vm277_vm1, %v509_v21 }
 0x1f8   : > { %v470_v23 = vpop.f32.mrf.mxu2  ;;  %v1910_v24 = vpop.f32.mrf.mxu3 }
 0x1f9   : > { %v471_v29 = vadd.f32 %v1849_v28, %v470_v23 }
 0x1fb   : > { %v1912_v25 = vpop.f32.mrf.mxu0 }
 0x200   : > { %v472_v26 = vpop.f32.mrf.mxu2  ;;  %v1914_v27 = vpop.f32.mrf.mxu3 }
 0x201   : > { %v473_v30 = vadd.f32 %v1849_v28, %v472_v26 }
 0x203   : > { %v510_v31 = vpack.c.bf16 %v473_v30, %v471_v29  ;;  %v1918_v32 = vpop.f32.mrf.mxu0 }
 0x205   : > { %1364 = vmatmul.msk.bf16.gmra.mxu3 %vm277_vm1, %v510_v31 }
 0x206   : > { %1380 = vmatmul.msk.bf16.gmra.mxu0 %vm277_vm1, %v510_v31 }
 0x208   : > { %v475_v33 = vpop.f32.mrf.mxu2  ;;  %v1922_v34 = vpop.f32.mrf.mxu3 }
 0x209   : > { %v476_v38 = vadd.f32 %v1849_v28, %v475_v33 }
 0x20b   : > { %v1924_v35 = vpop.f32.mrf.mxu0 }
 0x210   : > { %v477_v36 = vpop.f32.mrf.mxu2  ;;  %v1926_v37 = vpop.f32.mrf.mxu3 }
 0x211   : > { %v478_v39 = vadd.f32 %v1849_v28, %v477_v36 }
 0x213   : > { %v511_v40 = vpack.c.bf16 %v478_v39, %v476_v38  ;;  %v1930_v41 = vpop.f32.mrf.mxu0 }
 0x215   : > { %1365 = vmatmul.msk.bf16.gmra.mxu3 %vm277_vm1, %v511_v40 }
 0x216   : > { %1381 = vmatmul.msk.bf16.gmra.mxu0 %vm277_vm1, %v511_v40 }
 0x218   : > { %v480_v42 = vpop.f32.mrf.mxu2  ;;  %v1934_v43 = vpop.f32.mrf.mxu3 }
 0x219   : > { %v481_v47 = vadd.f32 %v1849_v28, %v480_v42  ;;  %v772_v38 = vmax.f32 %v1934_v43, %v1930_v41 }
 0x21b   : > { %v1936_v44 = vpop.f32.mrf.mxu0 }
 0x220   : > { %v482_v45 = vpop.f32.mrf.mxu2  ;;  %v1938_v46 = vpop.f32.mrf.mxu3 }
 0x221   : > { %v483_v48 = vadd.f32 %v1849_v28, %v482_v45  ;;  %v766_v45 = vmax.f32 %v1922_v34, %v1918_v32 }
 0x223   : > { %v512_v49 = vpack.c.bf16 %v483_v48, %v481_v47  ;;  %v1942_v50 = vpop.f32.mrf.mxu0 }
 0x225   : > { %1366 = vmatmul.msk.bf16.gmra.mxu3 %vm277_vm1, %v512_v49 }
 0x226   : > { %1382 = vmatmul.msk.bf16.gmra.mxu0 %vm277_vm1, %v512_v49 }
 0x228   : > { %v485_v51 = vpop.f32.mrf.mxu2  ;;  %v1946_v52 = vpop.f32.mrf.mxu3 }
 0x229   : > { %v486_v57 = vadd.f32 %v1849_v28, %v485_v51  ;;  %v778_v30 = vmax.f32 %v1946_v52, %v1942_v50  ;;  %v760_v51 = vmax.f32 %v1910_v24, %v1906_v22 }
 0x22b   : > { %v1948_v53 = vpop.f32.mrf.mxu0 }
 0x230   : > { %v487_v55 = vpop.f32.mrf.mxu2  ;;  %v1950_v56 = vpop.f32.mrf.mxu3 }
 0x231   : > { %v488_v58 = vadd.f32 %v1849_v28, %v487_v55  ;;  %v781_v55 = vmax.f32 %v1950_v56, %v1948_v53 }
 0x233   : > { %v513_v59 = vpack.c.bf16 %v488_v58, %v486_v57  ;;  %v1954_v60 = vpop.f32.mrf.mxu0 }
 0x235   : > { %1367 = vmatmul.msk.bf16.gmra.mxu3 %vm277_vm1, %v513_v59 }
 0x236   : > { %1383 = vmatmul.msk.bf16.gmra.mxu0 %vm277_vm1, %v513_v59  ;;  %v754_v59 = vmax.f32 %v1898_v14, %v1894_v12 }
 0x238   : > { %v490_v61 = vpop.f32.mrf.mxu2  ;;  %v1958_v62 = vpop.f32.mrf.mxu3 }
 0x239   : > { %v491_v2 = vadd.f32 %v1849_v28, %v490_v61  ;;  %v784_v23 = vmax.f32 %v1958_v62, %v1954_v60  ;;  %v775_v61 = vmax.f32 %v1938_v46, %v1936_v44 }
 0x23b   : > { %v1960_v63 = vpop.f32.mrf.mxu0 }
 0x240   : > { %v492_v0 = vpop.f32.mrf.mxu2  ;;  %v1962_v1 = vpop.f32.mrf.mxu3 }
 0x241   : > { %v493_v3 = vadd.f32 %v1849_v28, %v492_v0  ;;  %v787_v47 = vmax.f32 %v1962_v1, %v1960_v63 }
 0x243   : > { %v514_v4 = vpack.c.bf16 %v493_v3, %v491_v2  ;;  %v1966_v5 = vpop.f32.mrf.mxu0  ;;  %v769_v3 = vmax.f32 %v1926_v37, %v1924_v35 }
 0x245   : > { %1368 = vmatmul.msk.bf16.gmra.mxu3 %vm277_vm1, %v514_v4 }
 0x246   : > { %1384 = vmatmul.msk.bf16.gmra.mxu0 %vm277_vm1, %v514_v4 }
 0x248   : > { %v495_v6 = vpop.f32.mrf.mxu2  ;;  %v1970_v7 = vpop.f32.mrf.mxu3 }
 0x249   : > { %v496_v11 = vadd.f32 %v1849_v28, %v495_v6  ;;  %v790_v39 = vmax.f32 %v1970_v7, %v1966_v5 }
 0x24b   : > { %v1972_v8 = vpop.f32.mrf.mxu0 }
 0x250   : > { %v497_v9 = vpop.f32.mrf.mxu2  ;;  %v1974_v10 = vpop.f32.mrf.mxu3 }
 0x251   : > { %v498_v13 = vadd.f32 %v1849_v28, %v497_v9  ;;  %v793_v16 = vmax.f32 %v1974_v10, %v1972_v8  ;;  %v763_v9 = vmax.f32 %v1914_v27, %v1912_v25 }
 0x253   : > { %v515_v18 = vpack.c.bf16 %v498_v13, %v496_v11  ;;  %v1980_v20 = vpop.f32.mrf.mxu0  ;;  %794 = vmax.xlane.f32.xlu2 %v793_v16  ;;  %v757_v16 = vmax.f32 %v1902_v17, %v1900_v15 }
 0x255   : > { %1369 = vmatmul.msk.bf16.gmra.mxu3 %vm277_vm1, %v515_v18 }
 0x256   : > { %1385 = vmatmul.msk.bf16.gmra.mxu0 %vm277_vm1, %v515_v18 }
 0x258   : > { %v1984_v21 = vpop.f32.mrf.mxu3 }
 0x259   : > { %v796_v26 = vmax.f32 %v1984_v21, %v1980_v20 }
 0x25b   : > { %v1990_v28 = vpop.f32.mrf.mxu0  ;;  %785 = vmax.xlane.f32.xlu2 %v784_v23  ;;  %797 = vmax.xlane.f32.xlu0 %v796_v26 }
 0x260   : > { %v1992_v29 = vpop.f32.mrf.mxu3 }
 0x261   : > { %v799_v31 = vmax.f32 %v1992_v29, %v1990_v28 }
 0x263   : > { %v1998_v33 = vpop.f32.mrf.mxu0  ;;  %779 = vmax.xlane.f32.xlu2 %v778_v30  ;;  %800 = vmax.xlane.f32.xlu1 %v799_v31 }
 0x264   : > { %2353 = vst [vmem:[#allocation15_spill] sm:$0xff] %v1998_v33 }
 0x268   : > { %v2000_v36 = vpop.f32.mrf.mxu3 }
 0x269   : > { %2354 = vst [vmem:[#allocation16_spill] sm:$0xff] %v2000_v36 }
 0x26b   : > { %v2006_v40 = vpop.f32.mrf.mxu0  ;;  %773 = vmax.xlane.f32.xlu2 %v772_v38  ;;  %791 = vmax.xlane.f32.xlu1 %v790_v39 }
 0x26c   : > { %2355 = vst [vmem:[#allocation17_spill] sm:$0xff] %v2006_v40 }
 0x270   : > { %v2008_v42 = vpop.f32.mrf.mxu3 }
 0x271   : > { %2356 = vst [vmem:[#allocation18_spill] sm:$0xff] %v2008_v42 }
 0x273   : > { %v2014_v48 = vpop.f32.mrf.mxu0  ;;  %767 = vmax.xlane.f32.xlu2 %v766_v45  ;;  %788 = vmax.xlane.f32.xlu1 %v787_v47 }
 0x278   : > { %v2016_v49 = vpop.f32.mrf.mxu3 }
 0x27b   : > { %v2022_v57 = vpop.f32.mrf.mxu0  ;;  %761 = vmax.xlane.f32.xlu2 %v760_v51  ;;  %782 = vmax.xlane.f32.xlu1 %v781_v55 }
 0x27c   : > { %2357 = vst [vmem:[#allocation19_spill] sm:$0xff] %v2022_v57 }
 0x280   : > { %v2024_v58 = vpop.f32.mrf.mxu3 }
 0x281   : > { %2358 = vst [vmem:[#allocation20_spill] sm:$0xff] %v2024_v58 }
 0x283   : > { %v2030_v0 = vpop.f32.mrf.mxu0  ;;  %755 = vmax.xlane.f32.xlu2 %v754_v59  ;;  %776 = vmax.xlane.f32.xlu1 %v775_v61 }
 0x288   : > { %v2032_v2 = vpop.f32.mrf.mxu3 }
 0x28b   : > { %v2036_v4 = vpop.f32.mrf.mxu0  ;;  %770 = vmax.xlane.f32.xlu1 %v769_v3 }
 0x290   : > { %v2038_v6 = vpop.f32.mrf.mxu3 }
 0x291   : > { %2359 = vst [vmem:[#allocation21_spill] sm:$0xff] %v2038_v6 }
 0x293   : > { %v2042_v11 = vpop.f32.mrf.mxu0  ;;  %764 = vmax.xlane.f32.xlu1 %v763_v9 }
 0x298   : > { %v2044_v13 = vpop.f32.mrf.mxu3 }
 0x29b   : > { %v2048_v18 = vpop.f32.mrf.mxu0  ;;  %758 = vmax.xlane.f32.xlu1 %v757_v16 }
 0x2a0   : > { %v2050_v23 = vpop.f32.mrf.mxu3 }
 0x2a3   : > { %v2052_v26 = vpop.f32.mrf.mxu0 }
 0x2a8   : > { %v2054_v30 = vpop.f32.mrf.mxu3 }
 0x2ab   : > { %v2056_v31 = vpop.f32.mrf.mxu0 }
 0x2b0   : > { %v2058_v38 = vpop.f32.mrf.mxu3 }
 0x2b3   : > { %v2060_v39 = vpop.f32.mrf.mxu0 }
 0x2b8   : > { %v2062_v45 = vpop.f32.mrf.mxu3 }
 0x2bb   : > { %v2064_v47 = vpop.f32.mrf.mxu0 }
 0x2c0   : > { %v2066_v51 = vpop.f32.mrf.mxu3 }
 0x2c3   : > { %v2068_v55 = vpop.f32.mrf.mxu0 }
 0x2c6   : > { %v795_v61 = vpop.xlane.xlu2 %794 }
 0x2c8   : > { %v2070_v59 = vpop.f32.mrf.mxu3 }
 0x2cb   : > { %v2072_v3 = vpop.f32.mrf.mxu0 }
 0x2ce   : > { %v798_v9 = vpop.xlane.xlu0 %797  ;;  %v786_v54 = vpop.xlane.xlu2 %785 }
 0x2cf   : > { %v878_v19 = vsub.f32 %v1984_v21, %v798_v9  ;;  %v879_v42 = vsub.f32 %v1980_v20, %v798_v9  ;;  %v876_v21 = vsub.f32 %v1974_v10, %v795_v61  ;;  %v877_v20 = vsub.f32 %v1972_v8, %v795_v61 }
 0x2d0   : > { %v2074_v16 = vpop.f32.mrf.mxu3  ;;  %v871_v61 = vsub.f32 %v1954_v60, %v786_v54 }
 0x2d1   : > { %v970_v57 = vmul.f32 1.442695, %v878_v19  ;;  %v972_v15 = vmul.f32 1.442695, %v879_v42  ;;  %v841_v60 = vmax.f32 %v2074_v16, %v2072_v3 }
 0x2d3   : > { %v2078_v40 = vpop.f32.mrf.mxu0  ;;  %1460 = vpow2.f32 %v970_v57 }
 0x2d4   : > { %1462 = vpow2.f32 %v972_v15 }
 0x2d6   : > { %v801_v58 = vpop.xlane.xlu1 %800  ;;  %v780_v19 = vpop.xlane.xlu2 %779 }
 0x2d7   : > { %v880_v36 = vsub.f32 %v1992_v29, %v801_v58  ;;  %v881_v33 = vsub.f32 %v1990_v28, %v801_v58  ;;  %v966_v28 = vmul.f32 1.442695, %v876_v21  ;;  %v968_v58 = vmul.f32 1.442695, %v877_v20 }
 0x2d8   : > { %v2082_v17 = vpop.f32.mrf.mxu3 }
 0x2d9   : > { %v974_v12 = vmul.f32 1.442695, %v880_v36  ;;  %v844_v14 = vmax.f32 %v2082_v17, %v2078_v40  ;;  %v976_v6 = vmul.f32 1.442695, %v881_v33  ;;  %v1461_v10 = vpop.eup %1460 }
 0x2da   : > { %v1463_v15 = vpop.eup %1462 }
 0x2db   : > { %845 = vmax.xlane.f32.xlu2 %v844_v14  ;;  %1464 = vpow2.f32 %v974_v12  ;;  %v2090_v9 = vpop.f32.mrf.mxu0  ;;  %v838_v14 = vmax.f32 %v2070_v59, %v2068_v55 }
 0x2dc   : > { %1466 = vpow2.f32 %v976_v6 }
 0x2dd   : > { %1468 = vpow2.f32 %v966_v28 }
 0x2de   : > { %v792_v29 = vpop.xlane.xlu1 %791  ;;  %1470 = vpow2.f32 %v968_v58 }
 0x2df   : > { %v874_v42 = vsub.f32 %v1970_v7, %v792_v29  ;;  %v875_v36 = vsub.f32 %v1966_v5, %v792_v29  ;;  %v870_v7 = vsub.f32 %v1958_v62, %v786_v54  ;;  %v832_v54 = vmax.f32 %v2062_v45, %v2060_v39 }
 0x2e0   : > { %v2092_v33 = vpop.f32.mrf.mxu3 }
 0x2e1   : > { %v962_v57 = vmul.f32 1.442695, %v874_v42  ;;  %v847_v12 = vmax.f32 %v2092_v33, %v2090_v9  ;;  %v964_v8 = vmul.f32 1.442695, %v875_v36  ;;  %v1465_v6 = vpop.eup %1464  ;;  %v954_v42 = vmul.f32 1.442695, %v870_v7 }
 0x2e2   : > { %v1467_v5 = vpop.eup %1466  ;;  %v1056_v21 = vpack.c.bf16 %v1465_v6, %v1461_v10  ;;  %v956_v36 = vmul.f32 1.442695, %v871_v61 }
 0x2e3   : > { %839 = vmax.xlane.f32.xlu2 %v838_v14  ;;  %848 = vmax.xlane.f32.xlu1 %v847_v12  ;;  %1472 = vpow2.f32 %v962_v57  ;;  %v2100_v20 = vpack.c.bf16 %v1467_v5, %v1463_v15  ;;  %v774_v14 = vpop.xlane.xlu2 %773  ;;  %v1469_v58 = vpop.eup %1468 }
 0x2e4   : > { %1474 = vpow2.f32 %v964_v8  ;;  %1074 = vmatpush.bf16.xpose.msra.mxu1 %v1056_v21  ;;  %1134 = vmatpush.bf16.xpose.msra.mxu2 %v1056_v21  ;;  %v1471_v10 = vpop.eup %1470  ;;  %v866_v8 = vsub.f32 %v1946_v52, %v780_v19 }
 0x2e5   : > { %1147 = vmatpush.bf16.xpose.msrb.mxu3 %v2100_v20  ;;  %1476 = vpow2.f32 %v954_v42 }
 0x2e6   : > { %v789_v29 = vpop.xlane.xlu1 %788  ;;  %1478 = vpow2.f32 %v956_v36  ;;  %v946_v61 = vmul.f32 1.442695, %v866_v8 }
 0x2e7   : > { %v872_v28 = vsub.f32 %v1962_v1, %v789_v29  ;;  %v873_v62 = vsub.f32 %v1960_v63, %v789_v29  ;;  %v867_v63 = vsub.f32 %v1942_v50, %v780_v19  ;;  %v826_v50 = vmax.f32 %v2054_v30, %v2052_v26 }
 0x2e8   : > { %v835_v19 = vmax.f32 %v2066_v51, %v2064_v47 }
 0x2e9   : > { %v958_v12 = vmul.f32 1.442695, %v872_v28  ;;  %v960_v57 = vmul.f32 1.442695, %v873_v62  ;;  %v1473_v15 = vpop.eup %1472  ;;  %v948_v29 = vmul.f32 1.442695, %v867_v63 }
 0x2ea   : > { %v1475_v1 = vpop.eup %1474  ;;  %v1054_v6 = vpack.c.bf16 %v1469_v58, %v1473_v15 }
 0x2eb   : > { %833 = vmax.xlane.f32.xlu2 %v832_v54  ;;  %842 = vmax.xlane.f32.xlu1 %v841_v60  ;;  %1480 = vpow2.f32 %v958_v12  ;;  %v2111_v7 = vpack.c.bf16 %v1471_v10, %v1475_v1  ;;  %v1477_v42 = vpop.eup %1476  ;;  %v768_v36 = vpop.xlane.xlu2 %767  ;;  %v862_v54 = vsub.f32 %v1934_v43, %v774_v14 }
 0x2ec   : > { %1482 = vpow2.f32 %v960_v57  ;;  %1075 = vmatpush.bf16.xpose.msra.mxu1 %v1054_v6  ;;  %1135 = vmatpush.bf16.xpose.msra.mxu2 %v1054_v6  ;;  %v1479_v62 = vpop.eup %1478  ;;  %v858_v6 = vsub.f32 %v1922_v34, %v768_v36 }
 0x2ed   : > { %1148 = vmatpush.bf16.xpose.msrb.mxu3 %v2111_v7  ;;  %1484 = vpow2.f32 %v946_v61  ;;  %v938_v15 = vmul.f32 1.442695, %v862_v54 }
 0x2ee   : > { %v783_v5 = vpop.xlane.xlu1 %782  ;;  %1486 = vpow2.f32 %v948_v29  ;;  %v930_v34 = vmul.f32 1.442695, %v858_v6 }
 0x2ef   : > { %v868_v21 = vsub.f32 %v1950_v56, %v783_v5  ;;  %v869_v52 = vsub.f32 %v1948_v53, %v783_v5  ;;  %v863_v53 = vsub.f32 %v1930_v41, %v774_v14  ;;  %v820_v14 = vmax.f32 %v2044_v13, %v2042_v11 }
 0x2f0   : > { %v829_v5 = vmax.f32 %v2058_v38, %v2056_v31 }
 0x2f1   : > { %v950_v28 = vmul.f32 1.442695, %v868_v21  ;;  %v952_v58 = vmul.f32 1.442695, %v869_v52  ;;  %v1481_v12 = vpop.eup %1480  ;;  %v940_v1 = vmul.f32 1.442695, %v863_v53  ;;  %v859_v21 = vsub.f32 %v1918_v32, %v768_v36 }
 0x2f2   : > { %v1483_v56 = vpop.eup %1482  ;;  %v1052_v60 = vpack.c.bf16 %v1481_v12, %v1477_v42  ;;  %v814_v36 = vmax.f32 %v2032_v2, %v2030_v0 }
 0x2f3   : > { %827 = vmax.xlane.f32.xlu2 %v826_v50  ;;  %836 = vmax.xlane.f32.xlu1 %v835_v19  ;;  %1488 = vpow2.f32 %v950_v28  ;;  %v2122_v10 = vpack.c.bf16 %v1483_v56, %v1479_v62  ;;  %v1485_v63 = vpop.eup %1484  ;;  %v932_v50 = vmul.f32 1.442695, %v859_v21 }
 0x2f4   : > { %1490 = vpow2.f32 %v952_v58  ;;  %1076 = vmatpush.bf16.xpose.msra.mxu1 %v1052_v60  ;;  %1136 = vmatpush.bf16.xpose.msra.mxu2 %v1052_v60  ;;  %v1487_v61 = vpop.eup %1486  ;;  %v823_v58 = vmax.f32 %v2050_v23, %v2048_v18 }
 0x2f5   : > { %1149 = vmatpush.bf16.xpose.msrb.mxu3 %v2122_v10  ;;  %1492 = vpow2.f32 %v938_v15 }
 0x2f6   : > { %v777_v57 = vpop.xlane.xlu1 %776  ;;  %1494 = vpow2.f32 %v940_v1 }
 0x2f7   : > { %v864_v8 = vsub.f32 %v1938_v46, %v777_v57  ;;  %v865_v43 = vsub.f32 %v1936_v44, %v777_v57  ;;  %v762_v46 = vpop.xlane.xlu2 %761 }
 0x2f8   : > { %v854_v54 = vsub.f32 %v1910_v24, %v762_v46  ;;  %v855_v57 = vsub.f32 %v1906_v22, %v762_v46 }
 0x2f9   : > { %v942_v41 = vmul.f32 1.442695, %v864_v8  ;;  %v944_v52 = vmul.f32 1.442695, %v865_v43  ;;  %v1489_v29 = vpop.eup %1488 }
 0x2fa   : > { %v1491_v44 = vpop.eup %1490  ;;  %v1050_v42 = vpack.c.bf16 %v1489_v29, %v1485_v63  ;;  %v922_v8 = vmul.f32 1.442695, %v854_v54  ;;  %v924_v1 = vmul.f32 1.442695, %v855_v57  ;;  %v2361_v29 = vld [vmem:[#allocation12_spill] sm:$0xff]  ;;  %v2365_v57 = vld [vmem:[#allocation15_spill] sm:$0xff] }
 0x2fb   : > { %821 = vmax.xlane.f32.xlu2 %v820_v14  ;;  %830 = vmax.xlane.f32.xlu1 %v829_v5  ;;  %1496 = vpow2.f32 %v942_v41  ;;  %v2133_v28 = vpack.c.bf16 %v1491_v44, %v1487_v61  ;;  %v1493_v12 = vpop.eup %1492  ;;  %v808_v5 = vmax.f32 %v2016_v49, %v2014_v48  ;;  %v2360_v61 = vld [vmem:[#allocation21_spill] sm:$0xff] }
 0x2fc   : > { %1498 = vpow2.f32 %v944_v52  ;;  %1077 = vmatpush.bf16.xpose.msra.mxu1 %v1050_v42  ;;  %1137 = vmatpush.bf16.xpose.msra.mxu2 %v1050_v42  ;;  %v1495_v60 = vpop.eup %1494  ;;  %v817_v21 = vmax.f32 %v2360_v61, %v2036_v4 }
 0x2fd   : > { %1150 = vmatpush.bf16.xpose.msrb.mxu3 %v2133_v28  ;;  %1500 = vpow2.f32 %v930_v34 }
 0x2fe   : > { %v771_v19 = vpop.xlane.xlu1 %770  ;;  %1502 = vpow2.f32 %v932_v50  ;;  %v2362_v50 = vld [vmem:[#allocation11_spill] sm:$0xff] }
 0x2ff   : > { %v860_v32 = vsub.f32 %v1926_v37, %v771_v19  ;;  %v861_v62 = vsub.f32 %v1924_v35, %v771_v19  ;;  %v756_v63 = vpop.xlane.xlu2 %755 }
 0x300   : > { %v850_v44 = vsub.f32 %v2361_v29, %v756_v63  ;;  %v851_v19 = vsub.f32 %v2362_v50, %v756_v63 }
 0x301   : > { %v934_v56 = vmul.f32 1.442695, %v860_v32  ;;  %v936_v53 = vmul.f32 1.442695, %v861_v62  ;;  %v1497_v15 = vpop.eup %1496 }
 0x302   : > { %v1499_v35 = vpop.eup %1498  ;;  %v1048_v37 = vpack.c.bf16 %v1497_v15, %v1493_v12  ;;  %v914_v32 = vmul.f32 1.442695, %v850_v44  ;;  %v916_v62 = vmul.f32 1.442695, %v851_v19  ;;  %v2363_v12 = vld [vmem:[#allocation14_spill] sm:$0xff]  ;;  %v2366_v15 = vld [vmem:[#allocation16_spill] sm:$0xff] }
 0x303   : > { %1504 = vpow2.f32 %v934_v56  ;;  %815 = vmax.xlane.f32.xlu2 %v814_v36  ;;  %824 = vmax.xlane.f32.xlu1 %v823_v58  ;;  %v2144_v43 = vpack.c.bf16 %v1499_v35, %v1495_v60  ;;  %v1501_v6 = vpop.eup %1500  ;;  %v2364_v56 = vld [vmem:[#allocation13_spill] sm:$0xff]  ;;  %v802_v35 = vmax.f32 %v2366_v15, %v2365_v57 }
 0x304   : > { %1506 = vpow2.f32 %v936_v53  ;;  %1078 = vmatpush.bf16.xpose.msra.mxu1 %v1048_v37  ;;  %1138 = vmatpush.bf16.xpose.msra.mxu2 %v1048_v37  ;;  %v1503_v14 = vpop.eup %1502  ;;  %v1707_v37 = vmov 0   ;;  %v2369_v44 = vld [vmem:[#allocation17_spill] sm:$0xff] }
 0x305   : > { %1151 = vmatpush.bf16.xpose.msrb.mxu3 %v2144_v43  ;;  %1508 = vpow2.f32 %v922_v8  ;;  %1457 = vset.pattern.permute.xlu2 %v1707_v37 }
 0x306   : > { %v765_v24 = vpop.xlane.xlu1 %764  ;;  %1510 = vpow2.f32 %v924_v1  ;;  %1458 = vset.pattern.permute.xlu0 %v1707_v37 }
 0x307   : > { %v856_v22 = vsub.f32 %v1914_v27, %v765_v24  ;;  %v857_v41 = vsub.f32 %v1912_v25, %v765_v24  ;;  %v2367_v24 = vld [vmem:[#allocation19_spill] sm:$0xff] }
 0x309   : > { %v1505_v52 = vpop.eup %1504  ;;  %v926_v46 = vmul.f32 1.442695, %v856_v22  ;;  %v928_v42 = vmul.f32 1.442695, %v857_v41 }
 0x30a   : > { %v1507_v34 = vpop.eup %1506  ;;  %v1046_v27 = vpack.c.bf16 %v1505_v52, %v1501_v6  ;;  %v2368_v6 = vld [vmem:[#allocation20_spill] sm:$0xff] }
 0x30b   : > { %1512 = vpow2.f32 %v926_v46  ;;  %809 = vmax.xlane.f32.xlu2 %v808_v5  ;;  %818 = vmax.xlane.f32.xlu1 %v817_v21  ;;  %v1047_v25 = vpack.c.bf16 %v1507_v34, %v1503_v14  ;;  %v1509_v58 = vpop.eup %1508  ;;  %v811_v22 = vmax.f32 %v2368_v6, %v2367_v24  ;;  %v2370_v46 = vld [vmem:[#allocation18_spill] sm:$0xff] }
 0x30c   : > { %1514 = vpow2.f32 %v928_v42  ;;  %1079 = vmatpush.bf16.xpose.msra.mxu1 %v1046_v27  ;;  %1139 = vmatpush.bf16.xpose.msra.mxu2 %v1046_v27  ;;  %v1511_v60 = vpop.eup %1510  ;;  %v805_v42 = vmax.f32 %v2370_v46, %v2369_v44  ;;  %v266_v27 = vld [vmem:[%s2330_s4] sm:$0xff] }
 0x30d   : > { %1152 = vmatpush.bf16.xpose.msrb.mxu3 %v1047_v25  ;;  %1516 = vpow2.f32 %v914_v32  ;;  %v1708_v32 = vmov 1065369472  }
 0x30e   : > { %v759_v36 = vpop.xlane.xlu1 %758  ;;  %1518 = vpow2.f32 %v916_v62 }
 0x30f   : > { %v852_v54 = vsub.f32 %v2363_v12, %v759_v36  ;;  %v853_v53 = vsub.f32 %v2364_v56, %v759_v36 }
 0x311   : > { %v1513_v8 = vpop.eup %1512  ;;  %v918_v1 = vmul.f32 1.442695, %v852_v54  ;;  %v920_v63 = vmul.f32 1.442695, %v853_v53 }
 0x312   : > { %v1515_v41 = vpop.eup %1514  ;;  %v1044_v14 = vpack.c.bf16 %v1513_v8, %v1509_v58 }
 0x313   : > { %1520 = vpow2.f32 %v918_v1  ;;  %803 = vmax.xlane.f32.xlu2 %v802_v35  ;;  %812 = vmax.xlane.f32.xlu1 %v811_v22  ;;  %v1045_v5 = vpack.c.bf16 %v1515_v41, %v1511_v60  ;;  %v1517_v21 = vpop.eup %1516 }
 0x314   : > { %1522 = vpow2.f32 %v920_v63  ;;  %1080 = vmatpush.bf16.xpose.msra.mxu1 %v1044_v14  ;;  %1140 = vmatpush.bf16.xpose.msra.mxu2 %v1044_v14  ;;  %v1519_v52 = vpop.eup %1518 }
 0x315   : > { %1153 = vmatpush.bf16.xpose.msrb.mxu3 %v1045_v5 }
 0x319   : > { %v1521_v29 = vpop.eup %1520 }
 0x31a   : > { %v1523_v34 = vpop.eup %1522  ;;  %v1042_v50 = vpack.c.bf16 %v1521_v29, %v1517_v21 }
 0x31b   : > { %806 = vmax.xlane.f32.xlu1 %v805_v42  ;;  %v1043_v19 = vpack.c.bf16 %v1523_v34, %v1519_v52 }
 0x31c   : > { %1081 = vmatpush.bf16.xpose.msra.mxu1 %v1042_v50  ;;  %1141 = vmatpush.bf16.xpose.msra.mxu2 %v1042_v50 }
 0x31d   : > { %1154 = vmatpush.bf16.xpose.msrb.mxu3 %v1043_v19 }
 0x323   : > { %1082 = vmatmul.bf16.vlgmr.msra.gmra.mxu1 %v1708_v32 }
 0x324   : > { %1087 = vmatpush.bf16.xpose.msrb.mxu1 %v2100_v20 }
 0x32b   : > { %269 = vperm.xlu2 %1457, %v266_v27  }
 0x32c   : > { %1088 = vmatpush.bf16.xpose.msrb.mxu1 %v2111_v7 }
 0x334   : > { %1089 = vmatpush.bf16.xpose.msrb.mxu1 %v2122_v10 }
 0x33c   : > { %1090 = vmatpush.bf16.xpose.msrb.mxu1 %v2133_v28 }
 0x344   : > { %1091 = vmatpush.bf16.xpose.msrb.mxu1 %v2144_v43 }
 0x34c   : > { %1092 = vmatpush.bf16.xpose.msrb.mxu1 %v1047_v25 }
 0x34e   : > { %v2172_v62 = vpop.xlane.xlu2 %845 }
 0x34f   : > { %v910_v20 = vsub.f32 %v2082_v17, %v2172_v62 }
 0x351   : > { %v1034_v58 = vmul.f32 1.442695, %v910_v20 }
 0x353   : > { %1524 = vpow2.f32 %v1034_v58 }
 0x354   : > { %1093 = vmatpush.bf16.xpose.msrb.mxu1 %v1045_v5 }
 0x356   : > { %v2176_v7 = vpop.xlane.xlu2 %839  ;;  %v2178_v36 = vpop.xlane.xlu1 %848 }
 0x357   : > { %v912_v10 = vsub.f32 %v2092_v33, %v2178_v36  ;;  %v906_v28 = vsub.f32 %v2070_v59, %v2176_v7 }
 0x359   : > { %v1038_v12 = vmul.f32 1.442695, %v912_v10  ;;  %v1026_v54 = vmul.f32 1.442695, %v906_v28  ;;  %v1525_v53 = vpop.eup %1524 }
 0x35b   : > { %1526 = vpow2.f32 %v1038_v12 }
 0x35c   : > { %1094 = vmatpush.bf16.xpose.msrb.mxu1 %v1043_v19  ;;  %1528 = vpow2.f32 %v1026_v54 }
 0x35e   : > { %v2184_v43 = vpop.xlane.xlu2 %833  ;;  %v2186_v25 = vpop.xlane.xlu1 %842 }
 0x35f   : > { %v908_v17 = vsub.f32 %v2074_v16, %v2186_v25  ;;  %v902_v60 = vsub.f32 %v2062_v45, %v2184_v43 }
 0x361   : > { %v1030_v56 = vmul.f32 1.442695, %v908_v17  ;;  %v1527_v33 = vpop.eup %1526  ;;  %v1018_v16 = vmul.f32 1.442695, %v902_v60 }
 0x362   : > { %v1072_v35 = vpack.c.bf16 %v1527_v33, %v1525_v53  ;;  %v1529_v63 = vpop.eup %1528 }
 0x363   : > { %1095 = vmatmul.bf16.vlgmr.msrb.gmra.mxu1 %v1708_v32  ;;  %1530 = vpow2.f32 %v1030_v56 }
 0x364   : > { %1100 = vmatpush.bf16.xpose.msra.mxu1 %v1072_v35  ;;  %1160 = vmatpush.bf16.xpose.msra.mxu0 %v1072_v35  ;;  %1532 = vpow2.f32 %v1018_v16 }
 0x366   : > { %v2193_v59 = vpop.xlane.xlu2 %827  ;;  %v2195_v37 = vpop.xlane.xlu1 %836 }
 0x367   : > { %v904_v8 = vsub.f32 %v2066_v51, %v2195_v37  ;;  %v898_v41 = vsub.f32 %v2054_v30, %v2193_v59 }
 0x369   : > { %v1022_v1 = vmul.f32 1.442695, %v904_v8  ;;  %v1531_v22 = vpop.eup %1530  ;;  %v1010_v51 = vmul.f32 1.442695, %v898_v41 }
 0x36a   : > { %v1070_v45 = vpack.c.bf16 %v1531_v22, %v1529_v63  ;;  %v1533_v29 = vpop.eup %1532 }
 0x36b   : > { %1534 = vpow2.f32 %v1022_v1 }
 0x36c   : > { %1101 = vmatpush.bf16.xpose.msra.mxu1 %v1070_v45  ;;  %1161 = vmatpush.bf16.xpose.msra.mxu0 %v1070_v45  ;;  %1536 = vpow2.f32 %v1010_v51 }
 0x36e   : > { %v2201_v14 = vpop.xlane.xlu2 %821  ;;  %v2203_v5 = vpop.xlane.xlu1 %830 }
 0x36f   : > { %v900_v21 = vsub.f32 %v2058_v38, %v2203_v5  ;;  %v894_v34 = vsub.f32 %v2044_v13, %v2201_v14 }
 0x371   : > { %v1014_v52 = vmul.f32 1.442695, %v900_v21  ;;  %v1535_v42 = vpop.eup %1534  ;;  %v1002_v38 = vmul.f32 1.442695, %v894_v34  ;;  %v911_v21 = vsub.f32 %v2078_v40, %v2172_v62  ;;  %v2372_v34 = vld [vmem:[#allocation9_spill] sm:$0xff] }
 0x372   : > { %v1068_v30 = vpack.c.bf16 %v1535_v42, %v1533_v29  ;;  %v1537_v10 = vpop.eup %1536  ;;  %v2371_v29 = vld [vmem:[#allocation10_spill] sm:$0xff] }
 0x373   : > { %1538 = vpow2.f32 %v1014_v52 }
 0x374   : > { %1102 = vmatpush.bf16.xpose.msra.mxu1 %v1068_v30  ;;  %1162 = vmatpush.bf16.xpose.msra.mxu0 %v1068_v30  ;;  %1540 = vpow2.f32 %v1002_v38 }
 0x376   : > { %v2209_v50 = vpop.xlane.xlu2 %815  ;;  %v2211_v19 = vpop.xlane.xlu1 %824 }
 0x377   : > { %v896_v27 = vsub.f32 %v2050_v23, %v2211_v19  ;;  %v890_v12 = vsub.f32 %v2032_v2, %v2209_v50 }
 0x379   : > { %v1006_v20 = vmul.f32 1.442695, %v896_v27  ;;  %v1539_v58 = vpop.eup %1538  ;;  %v994_v23 = vmul.f32 1.442695, %v890_v12 }
 0x37a   : > { %v1066_v13 = vpack.c.bf16 %v1539_v58, %v1537_v10  ;;  %v1541_v53 = vpop.eup %1540  ;;  %v909_v58 = vsub.f32 %v2072_v3, %v2186_v25  ;;  %v905_v25 = vsub.f32 %v2064_v47, %v2195_v37 }
 0x37b   : > { %1542 = vpow2.f32 %v1006_v20  ;;  %v1036_v20 = vmul.f32 1.442695, %v911_v21 }
 0x37c   : > { %1103 = vmatpush.bf16.xpose.msra.mxu1 %v1066_v13  ;;  %1163 = vmatpush.bf16.xpose.msra.mxu0 %v1066_v13  ;;  %1544 = vpow2.f32 %v994_v23 }
 0x37e   : > { %v2217_v28 = vpop.xlane.xlu2 %809  ;;  %v2219_v17 = vpop.xlane.xlu1 %818 }
 0x37f   : > { %v892_v54 = vsub.f32 %v2360_v61, %v2219_v17  ;;  %v886_v60 = vsub.f32 %v2016_v49, %v2217_v28  ;;  %v913_v49 = vsub.f32 %v2090_v9, %v2178_v36 }
 0x381   : > { %v998_v56 = vmul.f32 1.442695, %v892_v54  ;;  %v1543_v33 = vpop.eup %1542  ;;  %v986_v61 = vmul.f32 1.442695, %v886_v60  ;;  %v1040_v9 = vmul.f32 1.442695, %v913_v49 }
 0x382   : > { %v1064_v2 = vpack.c.bf16 %v1543_v33, %v1541_v53  ;;  %v1545_v63 = vpop.eup %1544 }
 0x383   : > { %1546 = vpow2.f32 %v998_v56  ;;  %v1032_v56 = vmul.f32 1.442695, %v909_v58 }
 0x384   : > { %1104 = vmatpush.bf16.xpose.msra.mxu1 %v1064_v2  ;;  %1164 = vmatpush.bf16.xpose.msra.mxu0 %v1064_v2  ;;  %1548 = vpow2.f32 %v986_v61 }
 0x386   : > { %v2225_v35 = vpop.xlane.xlu2 %803  ;;  %v2227_v8 = vpop.xlane.xlu1 %812 }
 0x387   : > { %v888_v16 = vsub.f32 %v2368_v6, %v2227_v8  ;;  %v882_v22 = vsub.f32 %v2366_v15, %v2225_v35 }
 0x389   : > { %v990_v1 = vmul.f32 1.442695, %v888_v16  ;;  %v1547_v41 = vpop.eup %1546  ;;  %v978_v51 = vmul.f32 1.442695, %v882_v22  ;;  %v901_v22 = vsub.f32 %v2056_v31, %v2203_v5  ;;  %v895_v31 = vsub.f32 %v2042_v11, %v2201_v14 }
 0x38a   : > { %v1062_v45 = vpack.c.bf16 %v1547_v41, %v1545_v63  ;;  %v1549_v38 = vpop.eup %1548  ;;  %v889_v14 = vsub.f32 %v2367_v24, %v2227_v8 }
 0x38b   : > { %1550 = vpow2.f32 %v990_v1 }
 0x38c   : > { %1105 = vmatpush.bf16.xpose.msra.mxu1 %v1062_v45  ;;  %1165 = vmatpush.bf16.xpose.msra.mxu0 %v1062_v45  ;;  %1552 = vpow2.f32 %v978_v51  ;;  %v897_v45 = vsub.f32 %v2048_v18, %v2211_v19  ;;  %v891_v18 = vsub.f32 %v2030_v0, %v2209_v50 }
 0x38e   : > { %v270_v6 = vpop.permute.xlu2 %269  ;;  %v2237_v52 = vpop.xlane.xlu1 %806  ;;  %v1008_v5 = vmul.f32 1.442695, %v897_v45 }
 0x38f   : > { %v298_v42 = vadd.f32 %v2371_v29, %v270_v6  ;;  %v311_v15 = vadd.f32 %v2372_v34, %v270_v6  ;;  %v884_v30 = vsub.f32 %v2370_v46, %v2237_v52  ;;  %v907_v46 = vsub.f32 %v2068_v55, %v2176_v7 }
 0x390   : > { %v903_v55 = vsub.f32 %v2060_v39, %v2184_v43  ;;  %v1024_v7 = vmul.f32 1.442695, %v905_v25  ;;  %v899_v39 = vsub.f32 %v2052_v26, %v2193_v59  ;;  %v1016_v43 = vmul.f32 1.442695, %v901_v22 }
 0x391   : > { %v314_v36 = vpack.c.bf16 %v311_v15, %v298_v42  ;;  %v982_v27 = vmul.f32 1.442695, %v884_v30  ;;  %v1551_v40 = vpop.eup %1550  ;;  %v1028_v60 = vmul.f32 1.442695, %v907_v46  ;;  %v1004_v29 = vmul.f32 1.442695, %v895_v31 }
 0x392   : > { %v1060_v12 = vpack.c.bf16 %v1551_v40, %v1549_v38  ;;  %v1553_v23 = vpop.eup %1552  ;;  %v1020_v1 = vmul.f32 1.442695, %v903_v55  ;;  %v1012_v41 = vmul.f32 1.442695, %v899_v39  ;;  %v893_v59 = vsub.f32 %v2036_v4, %v2219_v17  ;;  %v1592_v55 = vld [vmem:[%s1817_s10] sm:$0xff]  ;;  %s1238_s10 = scalar_lea.hbm %s2331_s5, %s1392_s24 }
 0x393   : > { %v1128_v62 = vunpack.c.l.b16 %v314_v36  ;;  %v1129_v10 = vunpack.c.h.b16 %v314_v36  ;;  %1554 = vpow2.f32 %v982_v27  ;;  %v996_v30 = vmul.f32 1.442695, %v891_v18  ;;  %s1242_s9 = sshll.u32 %s1238_s10, 4  ;;  %s1243_s9 = int_to_ptr.hbm [resolvable:$true] %s1242_s9 }
 0x394   : > { %1556 = vpow2.f32 %v1040_v9  ;;  %1106 = vmatpush.bf16.xpose.msra.mxu1 %v1060_v12  ;;  %1166 = vmatpush.bf16.xpose.msra.mxu0 %v1060_v12  ;;  %v1000_v19 = vmul.f32 1.442695, %v893_v59  ;;  %v887_v4 = vsub.f32 %v2014_v48, %v2217_v28  ;;  %v992_v17 = vmul.f32 1.442695, %v889_v14  ;;  %s1637_s11 = sshra.s32 %s1243_s9, 4  ;;  %s1638_s11 = int_to_ptr.hbm [resolvable:$true] %s1637_s11 }
 0x395   : > { %v1130_v13 = vpack.c.b16 %v1128_v62, %v1128_v62  ;;  %v2245_v54 = vpack.c.b16 %v1129_v10, %v1129_v10  ;;  %1558 = vpow2.f32 %v1036_v20  ;;  %v885_v0 = vsub.f32 %v2369_v44, %v2237_v52  ;;  %s1639_s30 = scalar_lea.hbm %s1638_s11, 16  ;;  %p1644_p7 = scmp.lt.s32.totalorder %s1638_s11, %s2331_s5 }
 0x396   : > { %1560 = vpow2.f32 %v1032_v56  ;;  %v988_v27 = vmul.f32 1.442695, %v887_v4  ;;  %v883_v20 = vsub.f32 %v2365_v57, %v2225_v35  ;;  %p1640_p4 = scmp.ne.s32.totalorder %s1638_s11, %s1639_s30  ;;  %p1645_p8 = scmp.lt.s32.totalorder %s1643_s14, %s1639_s30 }
 0x397   : > { %1142 = vmatmul.bf16.vlgmr.msra.gmra.mxu2 %v1130_v13  ;;  %1155 = vmatmul.bf16.vlgmr.msrb.gmra.mxu3 %v2245_v54  ;;  %1562 = vpow2.f32 %v1028_v60  ;;  %v984_v24 = vmul.f32 1.442695, %v885_v0 }
 0x398   : > { %1564 = vpow2.f32 %v1024_v7  ;;  %v980_v40 = vmul.f32 1.442695, %v883_v20  ;;  %v1218_v7 = vunpack.c.l.bf16 %v1592_v55  ;;  %p1641_p5 = pnand %p1640_p4, %p1790_p9  ;;  %p1646_p10 = por %p1645_p8, %p1644_p7 }
 0x399   : > { %v1555_v53 = vpop.eup %1554  ;;  %1566 = vpow2.f32 %v1020_v1 }
 0x39a   : > { %v1557_v33 = vpop.eup %1556  ;;  %v1058_v2 = vpack.c.bf16 %v1555_v53, %v1553_v23  ;;  %1568 = vpow2.f32 %v1016_v43  ;;  %p1642_p6 = pneg %p1641_p5 }
 0x39b   : > { %v1559_v3 = vpop.eup %1558  ;;  %1570 = vpow2.f32 %v1012_v41 }
 0x39c   : > { %v2252_v16 = vpack.c.bf16 %v1557_v33, %v1559_v3  ;;  %1107 = vmatpush.bf16.xpose.msra.mxu1 %v1058_v2  ;;  %1167 = vmatpush.bf16.xpose.msra.mxu0 %v1058_v2  ;;  %v1561_v61 = vpop.eup %1560  ;;  %1572 = vpow2.f32 %v1008_v5  ;;  %p1647_p13 = pnand %p1646_p10, %p1642_p6 }
 0x39d   : > { %v1563_v63 = vpop.eup %1562  ;;  %1574 = vpow2.f32 %v1004_v29 }
 0x39e   : > { %v1071_v47 = vpack.c.bf16 %v1561_v61, %v1563_v63  ;;  %v1565_v37 = vpop.eup %1564  ;;  %1576 = vpow2.f32 %v1000_v19 }
 0x39f   : > { %v1567_v49 = vpop.eup %1566  ;;  %1578 = vpow2.f32 %v996_v30 }
 0x3a0   : > { %v1069_v21 = vpack.c.bf16 %v1565_v37, %v1567_v49  ;;  %v1083_v51 = vpop.f32.mrf.mxu1  ;;  %v1569_v6 = vpop.eup %1568  ;;  %1580 = vpow2.f32 %v992_v17 }
 0x3a1   : > { %v1571_v26 = vpop.eup %1570  ;;  %1582 = vpow2.f32 %v988_v27 }
 0x3a2   : > { %v1067_v42 = vpack.c.bf16 %v1569_v6, %v1571_v26  ;;  %v1573_v15 = vpop.eup %1572  ;;  %1584 = vpow2.f32 %v984_v24 }
 0x3a3   : > { %1168 = vmatmul.bf16.vlgmr.msra.gmra.mxu0 %v1130_v13  ;;  %1108 = vmatmul.bf16.vlgmr.msra.gmra.mxu1 %v1708_v32  ;;  %v1575_v11 = vpop.eup %1574  ;;  %1586 = vpow2.f32 %v980_v40 }
 0x3a4   : > { %1113 = vmatpush.bf16.xpose.msrb.mxu1 %v2252_v16  ;;  %v1065_v9 = vpack.c.bf16 %v1573_v15, %v1575_v11  ;;  %v1577_v36 = vpop.eup %1576  ;;  %v1219_v15 = vunpack.c.h.bf16 %v1592_v55 }
 0x3a5   : > { %v1579_v38 = vpop.eup %1578 }
 0x3a6   : > { %v1063_v50 = vpack.c.bf16 %v1577_v36, %v1579_v38  ;;  %v1581_v8 = vpop.eup %1580 }
 0x3a7   : > { %v1583_v62 = vpop.eup %1582 }
 0x3a8   : > { %v1085_v34 = vpop.f32.mrf.mxu1  ;;  %v1061_v48 = vpack.c.bf16 %v1581_v8, %v1583_v62  ;;  %v1585_v28 = vpop.eup %1584 }
 0x3a9   : > { %v1587_v10 = vpop.eup %1586 }
 0x3aa   : > { %v1059_v58 = vpack.c.bf16 %v1585_v28, %v1587_v10 }
 0x3ac   : > { %1114 = vmatpush.bf16.xpose.msrb.mxu1 %v1071_v47 }
 0x3b4   : > { %1115 = vmatpush.bf16.xpose.msrb.mxu1 %v1069_v21 }
 0x3bc   : > { %1116 = vmatpush.bf16.xpose.msrb.mxu1 %v1067_v42 }
 0x3c4   : > { %1117 = vmatpush.bf16.xpose.msrb.mxu1 %v1065_v9 }
 0x3cc   : > { %1118 = vmatpush.bf16.xpose.msrb.mxu1 %v1063_v50 }
 0x3d4   : > { %1119 = vmatpush.bf16.xpose.msrb.mxu1 %v1061_v48 }
 0x3dc   : > { %1120 = vmatpush.bf16.xpose.msrb.mxu1 %v1059_v58 }
 0x3e0   : > { %v1096_v44 = vpop.f32.mrf.mxu1 }
 0x3e1   : > { %v1097_v35 = vadd.f32 %v1096_v44, %v1083_v51 }
 0x3e3   : > { %1121 = vmatmul.bf16.vlgmr.msrb.gmra.mxu1 %v1708_v32  ;;  %1588 = vrcp.f32 %v1097_v35  ;;  %vm1191_vm2 = vweird.f32 %v1097_v35  ;;  %v1197_v32 = vand.u32 2147483648, %v1097_v35  ;;  %v1195_v56 = vand.u32 2147483647, %v1097_v35 }
 0x3e4   : > { %1173 = vmatpush.bf16.xpose.msra.mxu1 %v2252_v16 }
 0x3e5   : > { %v1198_v33 = vor.u32 1.1754944e-38, %v1197_v32  ;;  %vm1196_vm5 = vcmp.eq.f32.partialorder %v1195_v56, 8.507059e+37 }
 0x3e8   : > { %v1098_v57 = vpop.f32.mrf.mxu1 }
 0x3e9   : > { %v1589_v52 = vpop.eup %1588 }
 0x3ea   : > { %v1187_v12 = vmul.f32 %v1589_v52, %v1097_v35  ;;  %vm1192_vm3 = vweird.f32 %v1589_v52 }
 0x3eb   : > { %vm1193_vm4 = vmor %vm1191_vm2, %vm1192_vm3 }
 0x3ec   : > { %1174 = vmatpush.bf16.xpose.msra.mxu1 %v1071_v47  ;;  %v1188_v13 = vsub.f32 1.0, %v1187_v12 }
 0x3ee   : > { %v1189_v46 = vmul.f32 %v1589_v52, %v1188_v13 }
 0x3f0   : > { %v1190_v23 = vadd.f32 %v1589_v52, %v1189_v46 }
 0x3f2   : > { %v1194_v53 = vsel %vm1193_vm4, %v1589_v52, %v1190_v23 }
 0x3f3   : > { %v1199_v60 = vsel %vm1196_vm5, %v1198_v33, %v1194_v53 }
 0x3f4   : > { %1175 = vmatpush.bf16.xpose.msra.mxu1 %v1069_v21  ;;  %v1214_v16 = vperm.slane %v1199_v60, 0 }
 0x3fc   : > { %1176 = vmatpush.bf16.xpose.msra.mxu1 %v1067_v42 }
 0x404   : > { %1177 = vmatpush.bf16.xpose.msra.mxu1 %v1065_v9 }
 0x40c   : > { %1178 = vmatpush.bf16.xpose.msra.mxu1 %v1063_v50 }
 0x414   : > { %1179 = vmatpush.bf16.xpose.msra.mxu1 %v1061_v48 }
 0x41a   : > { %v1143_v2 = vpop.f32.mrf.mxu2  ;;  %v1156_v3 = vpop.f32.mrf.mxu3 }
 0x41b   : > { %v1157_v25 = vadd.f32 %v1156_v3, %v1143_v2 }
 0x41c   : > { %1180 = vmatpush.bf16.xpose.msra.mxu1 %v1059_v58 }
 0x41d   : > { %v1216_v61 = vmul.f32 %v1214_v16, %v1157_v25 }
 0x41f   : > { %v1220_v1 = vadd.f32 %v1218_v7, %v1216_v61 }
 0x420   : > { %v1169_v63 = vpop.f32.mrf.mxu0  ;;  %v1109_v39 = vpop.f32.mrf.mxu1 }
 0x421   : > { %1222 = vst [vmem:[%s2283_s17] sm:$0xff] %v1220_v1 }
 0x422   : > { %v1145_v22 = vpop.f32.mrf.mxu2  ;;  %v1158_v47 = vpop.f32.mrf.mxu3 }
 0x423   : > { %1181 = vmatmul.bf16.vlgmr.msra.gmra.mxu1 %v2245_v54 }
 0x428   : > { %v1171_v54 = vpop.f32.mrf.mxu0  ;;  %v1111_v43 = vpop.f32.mrf.mxu1 }
 0x460   : > { %v1122_v37 = vpop.f32.mrf.mxu1 }
 0x461   : > { %v1123_v49 = vadd.f32 %v1122_v37, %v1109_v39 }
 0x463   : > { %1590 = vrcp.f32 %v1123_v49  ;;  %v1211_v6 = vand.u32 2147483648, %v1123_v49  ;;  %vm1205_vm7 = vweird.f32 %v1123_v49  ;;  %v1209_v29 = vand.u32 2147483647, %v1123_v49 }
 0x465   : > { %v1212_v59 = vor.u32 1.1754944e-38, %v1211_v6  ;;  %vm1210_vm9 = vcmp.eq.f32.partialorder %v1209_v29, 8.507059e+37 }
 0x468   : > { %v1124_v41 = vpop.f32.mrf.mxu1 }
 0x469   : > { %v1591_v45 = vpop.eup %1590 }
 0x46a   : > { %v1201_v21 = vmul.f32 %v1591_v45, %v1123_v49  ;;  %vm1206_vm6 = vweird.f32 %v1591_v45 }
 0x46b   : > { %vm1207_vm8 = vmor %vm1205_vm7, %vm1206_vm6 }
 0x46c   : > { %v1202_v51 = vsub.f32 1.0, %v1201_v21 }
 0x46e   : > { %v1203_v31 = vmul.f32 %v1591_v45, %v1202_v51 }
 0x470   : > { %v1204_v5 = vadd.f32 %v1591_v45, %v1203_v31 }
 0x472   : > { %v1208_v26 = vsel %vm1207_vm8, %v1591_v45, %v1204_v5 }
 0x473   : > { %v1213_v42 = vsel %vm1210_vm9, %v1212_v59, %v1208_v26 }
 0x474   : > { %v1215_v19 = vperm.slane %v1213_v42, 0 }
 0x4a0   : > { %v1182_v34 = vpop.f32.mrf.mxu1 }
 0x4a1   : > { %v1183_v18 = vadd.f32 %v1182_v34, %v1169_v63 }
 0x4a3   : > { %v1217_v30 = vmul.f32 %v1215_v19, %v1183_v18 }
 0x4a5   : > { %v1221_v11 = vadd.f32 %v1219_v15, %v1217_v30 }
 0x4a7   : > { %1223 = vst [vmem:[%s2283_s17 + $0x8] sm:$0xff] %v1221_v11 }
 0x4a8   : > { %v1184_v14 = vpop.f32.mrf.mxu1 }
 0x4a9   : > { %1650 = shalt.err (!%p1647_p13)
}
 0x4aa   : > { %1395 = dma.vmem_to_hbm [thread:$0]  (%p1790_p9), %s1241_s28, 256, %s1243_s9, %s1225_s21  }
 0x4ab PF: > { %s1254_s25 = sand.u32 1, %s1685_s18   ;;  %p1402_p0 = pnand %p1329_p12, %p1797_p11 }
 0x4ac   : > { %s1255_s17 = scalar_lea.sflag [#allocation5], %s1254_s25 }
 0x4ad   : > { %p1403_p1 = pneg %p1402_p0 }
 0x4af   : > { %1680 = dma.done.wait (%p1403_p1), %s1255_s17, 256  }
 0x4b0   : > { %1682 = vsyncadd (%p1403_p1), %s1255_s17, 4294967040  ;;  %s21_s23 = sadd.s32 1, %s1705_s23   ;;  %s2373_s18 = smov %s1689_s19 }
 0x4b1   : > { %p18_p2 = scmp.ge.s32.totalorder %s21_s23, 4   ;;  %s2374_s19 = smov %s1693_s20 }
 0x4b2   : > { %s2375_s20 = smov %s1795_s7  ;;  %s2376_s21 = smov %s1701_s22 }
 0x4b3   : > { %s2377_s22 = smov %s2379_s26  ;;  %20 = sbr.rel (!%p18_p2) target bundleno = 6 (0x6), region = 90 }
 0x4b8   :  { %1261 = vsyncpa [#allocation4], 1 }
 0x4b9   :  { %1263 = vsyncpa [#allocation4 + $0x1], 1 }
 0x4ba   :  { %1264 = vsyncpa [#allocation5], 1 }
 0x4bb   :  { %1266 = vsyncpa [#allocation5 + $0x1], 1 }

</bundles_post_ra>
